<compile_context>
chip_gen: v6e
topology: v6e:2x2x1
jax: 0.10.0
libtpu: 0.0.40
codegen_flags: <defaults>
</compile_context>

<pallas_src>
import math

import jax
import jax.numpy as jnp
from jax.experimental import pallas as pl
from jax.experimental.pallas import tpu as pltpu

# ---------------- small synthetic BERT config ----------------
VOCAB = 100
VOCAB_PAD = 128      # word-emb rows padded to a full lane/tile multiple for the one-hot gather matmul
MAX_POS = 16
TYPE_VOCAB = 2
HIDDEN = 32
N_LAYERS = 2
N_HEADS = 4
HEAD_DIM = HIDDEN // N_HEADS
INTERMEDIATE = 64
N_CLASSES = 2
LN_EPS = 1e-12
LANE = 128           # TPU lane width; classifier output padded to this so the HBM store is lane-dense
B, S = 2, 8


# ---------------- single fused Pallas kernel: whole forward for ONE batch element ----------------
def _fused_forward_kernel(
    ids_ref, neg_ref,
    emb_tab_ref, misc_ref,
    qkv_w_ref, qkv_b_ref, ao_w_ref,
    ff1_w_ref, ff2_w_ref, layer_vec_ref, head_w_ref,
    logits_ref,
):
    f32, bf16 = jnp.float32, jnp.bfloat16
    seq = ids_ref.shape[0]
    H, FF, NH, HD = HIDDEN, INTERMEDIATE, N_HEADS, HEAD_DIM
    n_layers = qkv_w_ref.shape[0]

    def mm(a, w):
        # MXU: bf16 operands (weights are pre-cast bf16), f32 accumulation.
        return jnp.dot(a.astype(bf16), w, preferred_element_type=f32)

    def layer_norm(x, g, b):
        # reductions / elementwise stay f32 (v5e VPU has no bf16)
        mean = jnp.mean(x, axis=-1, keepdims=True)
        var = jnp.mean(jnp.square(x - mean), axis=-1, keepdims=True)
        return (x - mean) * jax.lax.rsqrt(var + LN_EPS) * g + b

    # packed small vectors: [emb_ln_g | emb_ln_b | pool_b | pad | out_b(128-lane aligned)]
    misc = misc_ref[...]                                                  # (1, 256) bf16
    emb_ln_g, emb_ln_b = misc[:, 0:H], misc[:, H:2 * H]
    pool_b, out_b = misc[:, 2 * H:3 * H], misc[:, LANE:2 * LANE]

    # --- embeddings: token gather as a bf16 one-hot MXU matmul (stays in VMEM/vregs) ---
    ids = ids_ref[...]                                                    # (seq, 1) int32
    vocab_iota = jax.lax.broadcasted_iota(jnp.int32, (seq, VOCAB_PAD), 1)
    onehot = (ids == vocab_iota).astype(bf16)                             # (seq, 128) bf16
    word = jnp.dot(onehot, emb_tab_ref[0:VOCAB_PAD, :], preferred_element_type=f32)   # (seq, H) f32
    pos = emb_tab_ref[VOCAB_PAD:VOCAB_PAD + seq, :]                       # (seq, H) bf16
    tok_type = emb_tab_ref[VOCAB_PAD + MAX_POS:VOCAB_PAD + MAX_POS + 1, :]  # token_type_ids == 0
    x = layer_norm(word + pos + tok_type, emb_ln_g, emb_ln_b)             # (seq, H) f32, no reshapes
    # embedding dropout (p=0.1): identity in eval mode

    # HF-style additive mask, precomputed in the wrapper; broadcast ONCE and reused by every layer
    neg = jnp.broadcast_to(neg_ref[...], (NH, seq, seq))                  # (NH, seq, seq) f32

    # --- transformer encoder layers (statically unrolled; intermediates never leave VMEM) ---
    for l in range(n_layers):
        lv = layer_vec_ref[l]                                             # (1, 256) bf16
        ao_b, attn_ln_g, attn_ln_b = lv[:, 0:H], lv[:, H:2 * H], lv[:, 2 * H:3 * H]
        ffn_ln_g = lv[:, 3 * H:4 * H]
        ff1_b, ff2_b = lv[:, 4 * H:4 * H + FF], lv[:, 4 * H + FF:5 * H + FF]
        ffn_ln_b = lv[:, 5 * H + FF:6 * H + FF]

        # batched-over-heads attention: the head axis is LEADING everywhere (weights packed per-head
        # at pack time), so there are no transposes, no per-head Python matmul loop, and no width-8
        # column slicing of a (seq, 3H) qkv. 1/sqrt(HEAD_DIM) is pre-folded into the Q weights/bias.
        xb = jnp.broadcast_to(x.astype(bf16)[None, :, :], (NH, seq, H))   # (NH, seq, H)
        qkv = jnp.einsum("hsk,hkd->hsd", xb, qkv_w_ref[l],
                         preferred_element_type=f32) + qkv_b_ref[l]       # (NH, seq, 3*HD) f32
        qkv = qkv.astype(bf16)
        q, k, v = qkv[..., 0:HD], qkv[..., HD:2 * HD], qkv[..., 2 * HD:3 * HD]
        scores = jnp.einsum("hqd,hkd->hqk", q, k, preferred_element_type=f32) + neg
        scores = scores - jnp.max(scores, axis=-1, keepdims=True)         # stable softmax
        probs = jnp.exp(scores)
        probs = probs * pl.reciprocal(jnp.sum(probs, axis=-1, keepdims=True), approx=True)  # EUP vrcp
        # attention-probs dropout (p=0.1): identity in eval mode
        ctx = jnp.einsum("hqk,hkd->hqd", probs.astype(bf16), v,
                         preferred_element_type=f32)                      # (NH, seq, HD)
        # merge-heads + output projection: one batched per-head matmul, then a cheap leading-axis sum
        proj = jnp.einsum("hqd,hdo->hqo", ctx.astype(bf16), ao_w_ref[l],
                          preferred_element_type=f32)                     # (NH, seq, H)
        attn = proj[0]
        for h in range(1, NH):
            attn = attn + proj[h]
        x = layer_norm(x + attn + ao_b, attn_ln_g, attn_ln_b)             # residual fused into LN

        hmid = mm(x, ff1_w_ref[l]) + ff1_b
        # TODO(synk): HF BERT uses exact erf-GELU; tanh-approx GELU (EUP tanh) used here.
        hmid = jax.nn.gelu(hmid, approximate=True)
        x = layer_norm(x + mm(hmid, ff2_w_ref[l]) + ff2_b, ffn_ln_g, ffn_ln_b)

    # --- pooler (dense + tanh on [CLS]) and classifier; dropouts identity in eval mode ---
    pooled = jnp.tanh(mm(x[0:1, :], head_w_ref[:, 0:H]) + pool_b)          # (1, H)
    # classifier weights zero-padded to 128 lanes -> the single output store is lane-dense
    logits = mm(pooled, head_w_ref[:, LANE:2 * LANE]) + out_b              # (1, LANE) f32
    logits_ref[...] = logits.reshape(1, 1, LANE)


# ---------------- parameters (deterministic synthetic init) ----------------
def init_params(key):
    def normal(k, shape):
        return 0.02 * jax.random.normal(k, shape, jnp.float32)

    keys = iter(jax.random.split(key, 64))
    p = {
        "word_emb": normal(next(keys), (VOCAB, HIDDEN)),
        "pos_emb": normal(next(keys), (MAX_POS, HIDDEN)),
        "type_emb": normal(next(keys), (TYPE_VOCAB, HIDDEN)),
        "emb_ln_g": jnp.ones((HIDDEN,), jnp.float32),
        "emb_ln_b": jnp.zeros((HIDDEN,), jnp.float32),
        "layers": [],
        "pool_w": normal(next(keys), (HIDDEN, HIDDEN)),
        "pool_b": jnp.zeros((HIDDEN,), jnp.float32),
        "out_w": normal(next(keys), (HIDDEN, N_CLASSES)),
        "out_b": jnp.zeros((N_CLASSES,), jnp.float32),
    }
    for _ in range(N_LAYERS):
        p["layers"].append({
            "q_w": normal(next(keys), (HIDDEN, HIDDEN)), "q_b": jnp.zeros((HIDDEN,), jnp.float32),
            "k_w": normal(next(keys), (HIDDEN, HIDDEN)), "k_b": jnp.zeros((HIDDEN,), jnp.float32),
            "v_w": normal(next(keys), (HIDDEN, HIDDEN)), "v_b": jnp.zeros((HIDDEN,), jnp.float32),
            "ao_w": normal(next(keys), (HIDDEN, HIDDEN)), "ao_b": jnp.zeros((HIDDEN,), jnp.float32),
            "attn_ln_g": jnp.ones((HIDDEN,), jnp.float32), "attn_ln_b": jnp.zeros((HIDDEN,), jnp.float32),
            "ff1_w": normal(next(keys), (HIDDEN, INTERMEDIATE)), "ff1_b": jnp.zeros((INTERMEDIATE,), jnp.float32),
            "ff2_w": normal(next(keys), (INTERMEDIATE, HIDDEN)), "ff2_b": jnp.zeros((HIDDEN,), jnp.float32),
            "ffn_ln_g": jnp.ones((HIDDEN,), jnp.float32), "ffn_ln_b": jnp.zeros((HIDDEN,), jnp.float32),
        })
    return p


def pack_params(p):
    """Pre-cast to bf16, fold attention scale into Q, pack per-head weights head-leading,
    concatenate small vectors into few lane-aligned slabs, pad classifier to 128 lanes."""
    bf16 = jnp.bfloat16
    H, FF, NH, HD = HIDDEN, INTERMEDIATE, N_HEADS, HEAD_DIM
    scale = 1.0 / math.sqrt(HD)

    word_pad = jnp.zeros((VOCAB_PAD, H), jnp.float32).at[:VOCAB].set(p["word_emb"])
    emb_tables = jnp.concatenate([word_pad, p["pos_emb"], p["type_emb"]], axis=0)   # (146, H)

    misc = jnp.zeros((1, 2 * LANE), jnp.float32)
    misc = misc.at[0, 0:H].set(p["emb_ln_g"])
    misc = misc.at[0, H:2 * H].set(p["emb_ln_b"])
    misc = misc.at[0, 2 * H:3 * H].set(p["pool_b"])
    misc = misc.at[0, LANE:LANE + N_CLASSES].set(p["out_b"])

    head_w = jnp.zeros((H, 2 * LANE), jnp.float32)
    head_w = head_w.at[:, 0:H].set(p["pool_w"])
    head_w = head_w.at[:, LANE:LANE + N_CLASSES].set(p["out_w"])

    qkv_w_l, qkv_b_l, ao_w_l, lv_l, ff1_l, ff2_l = [], [], [], [], [], []
    for lp in p["layers"]:
        qw, qb = lp["q_w"] * scale, lp["q_b"] * scale            # fold 1/sqrt(HD) into Q
        qkv_w_h = jnp.stack([
            jnp.concatenate([qw[:, h * HD:(h + 1) * HD],
                             lp["k_w"][:, h * HD:(h + 1) * HD],
                             lp["v_w"][:, h * HD:(h + 1) * HD]], axis=1)
            for h in range(NH)])                                  # (NH, H, 3*HD)
        qkv_b_h = jnp.stack([
            jnp.concatenate([qb[h * HD:(h + 1) * HD],
                             lp["k_b"][h * HD:(h + 1) * HD],
                             lp["v_b"][h * HD:(h + 1) * HD]])[None, :]
            for h in range(NH)])                                  # (NH, 1, 3*HD)
        ao_w_h = jnp.stack([lp["ao_w"][h * HD:(h + 1) * HD, :] for h in range(NH)])   # (NH, HD, H)

        lv = jnp.zeros((1, 2 * LANE), jnp.float32)
        lv = lv.at[0, 0:H].set(lp["ao_b"])
        lv = lv.at[0, H:2 * H].set(lp["attn_ln_g"])
        lv = lv.at[0, 2 * H:3 * H].set(lp["attn_ln_b"])
        lv = lv.at[0, 3 * H:4 * H].set(lp["ffn_ln_g"])
        lv = lv.at[0, 4 * H:4 * H + FF].set(lp["ff1_b"])
        lv = lv.at[0, 4 * H + FF:5 * H + FF].set(lp["ff2_b"])
        lv = lv.at[0, 5 * H + FF:6 * H + FF].set(lp["ffn_ln_b"])

        qkv_w_l.append(qkv_w_h); qkv_b_l.append(qkv_b_h); ao_w_l.append(ao_w_h)
        lv_l.append(lv); ff1_l.append(lp["ff1_w"]); ff2_l.append(lp["ff2_w"])

    bf = lambda a: a.astype(bf16)
    return {
        "emb_tables": bf(emb_tables),            # (146, H)
        "misc": bf(misc),                        # (1, 256)
        "qkv_w": bf(jnp.stack(qkv_w_l)),         # (L, NH, H, 3*HD)
        "qkv_b": bf(jnp.stack(qkv_b_l)),         # (L, NH, 1, 3*HD)
        "ao_w": bf(jnp.stack(ao_w_l)),           # (L, NH, HD, H)
        "ff1_w": bf(jnp.stack(ff1_l)),           # (L, H, FF)
        "ff2_w": bf(jnp.stack(ff2_l)),           # (L, FF, H)
        "layer_vec": bf(jnp.stack(lv_l)),        # (L, 1, 256)
        "head_w": bf(head_w),                    # (H, 256)
    }


# ---------------- forward: one pallas_call, grid over the batch ('parallel' -> both v7x TCs) ----------------
def sentiment_classifier_forward(packed, input_ids, attention_mask):
    Bsz, Seq = input_ids.shape
    ids = input_ids.reshape(Bsz * Seq, 1).astype(jnp.int32)
    neg_mask = ((1.0 - attention_mask.astype(jnp.float32)) * -1e9).reshape(Bsz, 1, Seq)

    inputs = (
        ids, neg_mask,
        packed["emb_tables"], packed["misc"],
        packed["qkv_w"], packed["qkv_b"], packed["ao_w"],
        packed["ff1_w"], packed["ff2_w"], packed["layer_vec"], packed["head_w"],
    )

    def full_spec(a):
        zeros = (0,) * a.ndim
        return pl.BlockSpec(a.shape, lambda b: zeros)   # whole array, never re-DMA'd across grid steps

    in_specs = [
        pl.BlockSpec((Seq, 1), lambda b: (b, 0)),       # this batch element's token ids
        pl.BlockSpec((1, 1, Seq), lambda b: (b, 0, 0)), # this batch element's additive mask
    ] + [full_spec(a) for a in inputs[2:]]
    out_specs = pl.BlockSpec((1, 1, LANE), lambda b: (b, 0, 0))

    # advisory cost estimate so XLA can schedule around the custom call
    flops_per_elem = (2 * Seq * VOCAB_PAD * HIDDEN
                      + N_LAYERS * (2 * Seq * HIDDEN * 3 * HIDDEN
                                    + 4 * N_HEADS * Seq * Seq * HEAD_DIM
                                    + 2 * Seq * HIDDEN * HIDDEN
                                    + 4 * Seq * HIDDEN * INTERMEDIATE)
                      + 2 * HIDDEN * HIDDEN + 2 * HIDDEN * LANE)
    transc_per_elem = N_LAYERS * (N_HEADS * Seq * Seq + Seq * INTERMEDIATE) + HIDDEN
    bytes_accessed = sum(int(a.size) * a.dtype.itemsize for a in inputs) + Bsz * LANE * 4

    logits_pad = pl.pallas_call(
        _fused_forward_kernel,
        grid=(Bsz,),
        in_specs=in_specs,
        out_specs=out_specs,
        out_shape=jax.ShapeDtypeStruct((Bsz, 1, LANE), jnp.float32),
        compiler_params=pltpu.CompilerParams(dimension_semantics=("parallel",)),
        cost_estimate=pl.CostEstimate(flops=int(Bsz * flops_per_elem),
                                      transcendentals=int(Bsz * transc_per_elem),
                                      bytes_accessed=int(bytes_accessed)),
    )(*inputs)
    return logits_pad.reshape(Bsz, LANE)[:, :N_CLASSES]   # slice lane-padded logits back to n_classes


if __name__ == "__main__":
    key = jax.random.PRNGKey(0)
    pkey, ikey = jax.random.split(key)
    params = init_params(pkey)
    packed = pack_params(params)

    input_ids = jax.random.randint(ikey, (B, S), 0, VOCAB, dtype=jnp.int32)
    attention_mask = jnp.ones((B, S), jnp.int32).at[:, -2:].set(0)        # trailing padding

    forward = jax.jit(sentiment_classifier_forward)
    logits = forward(packed, input_ids, attention_mask)
    jax.block_until_ready(logits)
    assert logits.shape == (B, N_CLASSES) and logits.dtype == jnp.float32
    print("KERNEL_OK")
</pallas_src>

<mosaic_0001>
module attributes {stable_mosaic.version = 11 : i64} {
  func.func @_fused_forward_kernel(%arg0: i32, %arg1: memref<8x1xi32, #tpu.memory_space<vmem>>, %arg2: memref<1x1x8xf32, #tpu.memory_space<vmem>>, %arg3: memref<146x32xbf16, #tpu.memory_space<vmem>>, %arg4: memref<1x256xbf16, #tpu.memory_space<vmem>>, %arg5: memref<2x4x32x24xbf16, #tpu.memory_space<vmem>>, %arg6: memref<2x4x1x24xbf16, #tpu.memory_space<vmem>>, %arg7: memref<2x4x8x32xbf16, #tpu.memory_space<vmem>>, %arg8: memref<2x32x64xbf16, #tpu.memory_space<vmem>>, %arg9: memref<2x64x32xbf16, #tpu.memory_space<vmem>>, %arg10: memref<2x1x256xbf16, #tpu.memory_space<vmem>>, %arg11: memref<32x256xbf16, #tpu.memory_space<vmem>>, %arg12: memref<1x1x128xf32, #tpu.memory_space<vmem>>) attributes {dimension_semantics = [#tpu.dimension_semantics<parallel>], iteration_bounds = array<i64: 2>, scalar_prefetch = 0 : i64, scratch_operands = 0 : i64, tpu.core_type = #tpu.core_type<tc>, window_params = [{transform_indices = @transform_0, window_bounds = array<i64: 8, 1>}, {transform_indices = @transform_1, window_bounds = array<i64: 1, 1, 8>}, {pipeline_mode = #tpu.pipeline_mode<synchronous>, transform_indices = @transform_2, window_bounds = array<i64: 146, 32>}, {pipeline_mode = #tpu.pipeline_mode<synchronous>, transform_indices = @transform_3, window_bounds = array<i64: 1, 256>}, {pipeline_mode = #tpu.pipeline_mode<synchronous>, transform_indices = @transform_4, window_bounds = array<i64: 2, 4, 32, 24>}, {pipeline_mode = #tpu.pipeline_mode<synchronous>, transform_indices = @transform_5, window_bounds = array<i64: 2, 4, 1, 24>}, {pipeline_mode = #tpu.pipeline_mode<synchronous>, transform_indices = @transform_6, window_bounds = array<i64: 2, 4, 8, 32>}, {pipeline_mode = #tpu.pipeline_mode<synchronous>, transform_indices = @transform_7, window_bounds = array<i64: 2, 32, 64>}, {pipeline_mode = #tpu.pipeline_mode<synchronous>, transform_indices = @transform_8, window_bounds = array<i64: 2, 64, 32>}, {pipeline_mode = #tpu.pipeline_mode<synchronous>, transform_indices = @transform_9, window_bounds = array<i64: 2, 1, 256>}, {pipeline_mode = #tpu.pipeline_mode<synchronous>, transform_indices = @transform_10, window_bounds = array<i64: 32, 256>}, {transform_indices = @transform_11, window_bounds = array<i64: 1, 1, 128>}]} {
    %c0 = arith.constant 0 : index
    %c0_0 = arith.constant 0 : index
    %0 = vector.load %arg4[%c0, %c0_0] : memref<1x256xbf16, #tpu.memory_space<vmem>>, vector<1x256xbf16>
    %1 = vector.extract_strided_slice %0 {offsets = [0, 0], sizes = [1, 32], strides = [1, 1]} : vector<1x256xbf16> to vector<1x32xbf16>
    %2 = vector.extract_strided_slice %0 {offsets = [0, 32], sizes = [1, 32], strides = [1, 1]} : vector<1x256xbf16> to vector<1x32xbf16>
    %3 = vector.extract_strided_slice %0 {offsets = [0, 64], sizes = [1, 32], strides = [1, 1]} : vector<1x256xbf16> to vector<1x32xbf16>
    %4 = vector.extract_strided_slice %0 {offsets = [0, 128], sizes = [1, 128], strides = [1, 1]} : vector<1x256xbf16> to vector<1x128xbf16>
    %c0_1 = arith.constant 0 : index
    %c0_2 = arith.constant 0 : index
    %5 = vector.load %arg1[%c0_1, %c0_2] : memref<8x1xi32, #tpu.memory_space<vmem>>, vector<8x1xi32>
    %6 = tpu.iota {dimensions = array<i32: 1>} : vector<8x128xi32>
    %7 = vector.broadcast %5 : vector<8x1xi32> to vector<8x128xi32>
    %8 = arith.cmpi eq, %7, %6 : vector<8x128xi32>
    %9 = arith.extui %8 : vector<8x128xi1> to vector<8x128xi32>
    %10 = arith.sitofp %9 : vector<8x128xi32> to vector<8x128xf32>
    %11 = arith.truncf %10 : vector<8x128xf32> to vector<8x128xbf16>
    %c0_3 = arith.constant 0 : index
    %c0_4 = arith.constant 0 : index
    %12 = vector.load %arg3[%c0_3, %c0_4] : memref<146x32xbf16, #tpu.memory_space<vmem>>, vector<128x32xbf16>
    %cst = arith.constant dense<0.000000e+00> : vector<8x32xf32>
    %13 = tpu.matmul %11, %12, %cst {dimension_numbers = #tpu.dot_dimension_numbers<[1], [0], [0], [1], [0, 0, 1, 1], [], []>} : vector<8x128xbf16>, vector<128x32xbf16>, vector<8x32xf32> -> vector<8x32xf32>
    %c128 = arith.constant 128 : index
    %c0_5 = arith.constant 0 : index
    %14 = vector.load %arg3[%c128, %c0_5] : memref<146x32xbf16, #tpu.memory_space<vmem>>, vector<8x32xbf16>
    %c144 = arith.constant 144 : index
    %c0_6 = arith.constant 0 : index
    %15 = vector.load %arg3[%c144, %c0_6] : memref<146x32xbf16, #tpu.memory_space<vmem>>, vector<1x32xbf16>
    %16 = arith.extf %14 : vector<8x32xbf16> to vector<8x32xf32>
    %17 = arith.addf %13, %16 : vector<8x32xf32>
    %18 = arith.extf %15 : vector<1x32xbf16> to vector<1x32xf32>
    %19 = vector.broadcast %18 : vector<1x32xf32> to vector<8x32xf32>
    %20 = arith.addf %17, %19 : vector<8x32xf32>
    %cst_7 = arith.constant dense<0.000000e+00> : vector<8xf32>
    %21 = vector.multi_reduction <add>, %20, %cst_7 [1] : vector<8x32xf32> to vector<8xf32>
    %22 = vector.shape_cast %21 : vector<8xf32> to vector<8x1xf32>
    %cst_8 = arith.constant 3.200000e+01 : f32
    %23 = vector.broadcast %cst_8 : f32 to vector<8x1xf32>
    %24 = arith.divf %22, %23 : vector<8x1xf32>
    %25 = vector.broadcast %24 : vector<8x1xf32> to vector<8x32xf32>
    %26 = arith.subf %20, %25 : vector<8x32xf32>
    %27 = arith.mulf %26, %26 : vector<8x32xf32>
    %cst_9 = arith.constant dense<0.000000e+00> : vector<8xf32>
    %28 = vector.multi_reduction <add>, %27, %cst_9 [1] : vector<8x32xf32> to vector<8xf32>
    %29 = vector.shape_cast %28 : vector<8xf32> to vector<8x1xf32>
    %cst_10 = arith.constant 3.200000e+01 : f32
    %30 = vector.broadcast %cst_10 : f32 to vector<8x1xf32>
    %31 = arith.divf %29, %30 : vector<8x1xf32>
    %32 = vector.broadcast %24 : vector<8x1xf32> to vector<8x32xf32>
    %33 = arith.subf %20, %32 : vector<8x32xf32>
    %cst_11 = arith.constant 9.99999996E-13 : f32
    %34 = vector.broadcast %cst_11 : f32 to vector<8x1xf32>
    %35 = arith.addf %31, %34 : vector<8x1xf32>
    %36 = math.rsqrt %35 : vector<8x1xf32>
    %37 = vector.broadcast %36 : vector<8x1xf32> to vector<8x32xf32>
    %38 = arith.mulf %33, %37 : vector<8x32xf32>
    %39 = arith.extf %1 : vector<1x32xbf16> to vector<1x32xf32>
    %40 = vector.broadcast %39 : vector<1x32xf32> to vector<8x32xf32>
    %41 = arith.mulf %38, %40 : vector<8x32xf32>
    %42 = arith.extf %2 : vector<1x32xbf16> to vector<1x32xf32>
    %43 = vector.broadcast %42 : vector<1x32xf32> to vector<8x32xf32>
    %44 = arith.addf %41, %43 : vector<8x32xf32>
    %c0_12 = arith.constant 0 : index
    %c0_13 = arith.constant 0 : index
    %c0_14 = arith.constant 0 : index
    %45 = vector.load %arg2[%c0_12, %c0_13, %c0_14] : memref<1x1x8xf32, #tpu.memory_space<vmem>>, vector<1x1x8xf32>
    %46 = vector.shape_cast %45 : vector<1x1x8xf32> to vector<1x1x8xf32>
    %47 = vector.broadcast %46 : vector<1x1x8xf32> to vector<4x8x8xf32>
    %c0_15 = arith.constant 0 : index
    %c0_16 = arith.constant 0 : index
    %c0_17 = arith.constant 0 : index
    %48 = vector.load %arg10[%c0_15, %c0_16, %c0_17] : memref<2x1x256xbf16, #tpu.memory_space<vmem>>, vector<1x1x256xbf16>
    %49 = vector.shape_cast %48 : vector<1x1x256xbf16> to vector<1x256xbf16>
    %50 = vector.extract_strided_slice %49 {offsets = [0, 0], sizes = [1, 32], strides = [1, 1]} : vector<1x256xbf16> to vector<1x32xbf16>
    %51 = vector.extract_strided_slice %49 {offsets = [0, 32], sizes = [1, 32], strides = [1, 1]} : vector<1x256xbf16> to vector<1x32xbf16>
    %52 = vector.extract_strided_slice %49 {offsets = [0, 64], sizes = [1, 32], strides = [1, 1]} : vector<1x256xbf16> to vector<1x32xbf16>
    %53 = vector.extract_strided_slice %49 {offsets = [0, 96], sizes = [1, 32], strides = [1, 1]} : vector<1x256xbf16> to vector<1x32xbf16>
    %54 = vector.extract_strided_slice %49 {offsets = [0, 128], sizes = [1, 64], strides = [1, 1]} : vector<1x256xbf16> to vector<1x64xbf16>
    %55 = vector.extract_strided_slice %49 {offsets = [0, 192], sizes = [1, 32], strides = [1, 1]} : vector<1x256xbf16> to vector<1x32xbf16>
    %56 = vector.extract_strided_slice %49 {offsets = [0, 224], sizes = [1, 32], strides = [1, 1]} : vector<1x256xbf16> to vector<1x32xbf16>
    %57 = arith.truncf %44 : vector<8x32xf32> to vector<8x32xbf16>
    %58 = vector.shape_cast %57 : vector<8x32xbf16> to vector<1x8x32xbf16>
    %59 = vector.shape_cast %58 : vector<1x8x32xbf16> to vector<1x8x32xbf16>
    %60 = vector.broadcast %59 : vector<1x8x32xbf16> to vector<4x8x32xbf16>
    %c0_18 = arith.constant 0 : index
    %c0_19 = arith.constant 0 : index
    %c0_20 = arith.constant 0 : index
    %c0_21 = arith.constant 0 : index
    %61 = vector.load %arg5[%c0_18, %c0_19, %c0_20, %c0_21] : memref<2x4x32x24xbf16, #tpu.memory_space<vmem>>, vector<1x4x32x24xbf16>
    %62 = vector.shape_cast %61 : vector<1x4x32x24xbf16> to vector<4x32x24xbf16>
    "tpu.trace_start"() <{level = 10 : i32, message = "hsk,hkd->hsd"}> : () -> ()
    %cst_22 = arith.constant dense<0.000000e+00> : vector<4x8x24xf32>
    %63 = tpu.matmul %60, %62, %cst_22 {dimension_numbers = #tpu.dot_dimension_numbers<[2], [1], [1], [2], [0, 0, 0, 1, 1, 2], [0], [0]>} : vector<4x8x32xbf16>, vector<4x32x24xbf16>, vector<4x8x24xf32> -> vector<4x8x24xf32>
    "tpu.trace_stop"() : () -> ()
    %c0_23 = arith.constant 0 : index
    %c0_24 = arith.constant 0 : index
    %c0_25 = arith.constant 0 : index
    %c0_26 = arith.constant 0 : index
    %64 = vector.load %arg6[%c0_23, %c0_24, %c0_25, %c0_26] : memref<2x4x1x24xbf16, #tpu.memory_space<vmem>>, vector<1x4x1x24xbf16>
    %65 = vector.shape_cast %64 : vector<1x4x1x24xbf16> to vector<4x1x24xbf16>
    %66 = arith.extf %65 : vector<4x1x24xbf16> to vector<4x1x24xf32>
    %67 = vector.broadcast %66 : vector<4x1x24xf32> to vector<4x8x24xf32>
    %68 = arith.addf %63, %67 : vector<4x8x24xf32>
    %69 = arith.truncf %68 : vector<4x8x24xf32> to vector<4x8x24xbf16>
    %70 = vector.extract_strided_slice %69 {offsets = [0, 0, 0], sizes = [4, 8, 8], strides = [1, 1, 1]} : vector<4x8x24xbf16> to vector<4x8x8xbf16>
    %71 = vector.extract_strided_slice %69 {offsets = [0, 0, 8], sizes = [4, 8, 8], strides = [1, 1, 1]} : vector<4x8x24xbf16> to vector<4x8x8xbf16>
    %72 = vector.extract_strided_slice %69 {offsets = [0, 0, 16], sizes = [4, 8, 8], strides = [1, 1, 1]} : vector<4x8x24xbf16> to vector<4x8x8xbf16>
    "tpu.trace_start"() <{level = 10 : i32, message = "hqd,hkd->hqk"}> : () -> ()
    %cst_27 = arith.constant dense<0.000000e+00> : vector<4x8x8xf32>
    %73 = tpu.matmul %70, %71, %cst_27 {dimension_numbers = #tpu.dot_dimension_numbers<[2], [2], [1], [1], [0, 0, 0, 1, 1, 1], [0], [0]>} : vector<4x8x8xbf16>, vector<4x8x8xbf16>, vector<4x8x8xf32> -> vector<4x8x8xf32>
    "tpu.trace_stop"() : () -> ()
    %74 = arith.addf %73, %47 : vector<4x8x8xf32>
    %cst_28 = arith.constant dense<0xFF800000> : vector<4x8xf32>
    %75 = vector.multi_reduction <maximumf>, %74, %cst_28 [2] : vector<4x8x8xf32> to vector<4x8xf32>
    %76 = vector.shape_cast %75 : vector<4x8xf32> to vector<4x8x1xf32>
    %77 = vector.broadcast %76 : vector<4x8x1xf32> to vector<4x8x8xf32>
    %78 = arith.subf %74, %77 : vector<4x8x8xf32>
    %79 = math.exp %78 : vector<4x8x8xf32>
    %cst_29 = arith.constant dense<0.000000e+00> : vector<4x8xf32>
    %80 = vector.multi_reduction <add>, %79, %cst_29 [2] : vector<4x8x8xf32> to vector<4x8xf32>
    %81 = vector.shape_cast %80 : vector<4x8xf32> to vector<4x8x1xf32>
    %82 = tpu.reciprocal %81 {approx = true} : vector<4x8x1xf32> -> vector<4x8x1xf32>
    %83 = vector.broadcast %82 : vector<4x8x1xf32> to vector<4x8x8xf32>
    %84 = arith.mulf %79, %83 : vector<4x8x8xf32>
    %85 = arith.truncf %84 : vector<4x8x8xf32> to vector<4x8x8xbf16>
    "tpu.trace_start"() <{level = 10 : i32, message = "hqk,hkd->hqd"}> : () -> ()
    %cst_30 = arith.constant dense<0.000000e+00> : vector<4x8x8xf32>
    %86 = tpu.matmul %85, %72, %cst_30 {dimension_numbers = #tpu.dot_dimension_numbers<[2], [1], [1], [2], [0, 0, 0, 1, 1, 2], [0], [0]>} : vector<4x8x8xbf16>, vector<4x8x8xbf16>, vector<4x8x8xf32> -> vector<4x8x8xf32>
    "tpu.trace_stop"() : () -> ()
    %87 = arith.truncf %86 : vector<4x8x8xf32> to vector<4x8x8xbf16>
    %c0_31 = arith.constant 0 : index
    %c0_32 = arith.constant 0 : index
    %c0_33 = arith.constant 0 : index
    %c0_34 = arith.constant 0 : index
    %88 = vector.load %arg7[%c0_31, %c0_32, %c0_33, %c0_34] : memref<2x4x8x32xbf16, #tpu.memory_space<vmem>>, vector<1x4x8x32xbf16>
    %89 = vector.shape_cast %88 : vector<1x4x8x32xbf16> to vector<4x8x32xbf16>
    "tpu.trace_start"() <{level = 10 : i32, message = "hqd,hdo->hqo"}> : () -> ()
    %cst_35 = arith.constant dense<0.000000e+00> : vector<4x8x32xf32>
    %90 = tpu.matmul %87, %89, %cst_35 {dimension_numbers = #tpu.dot_dimension_numbers<[2], [1], [1], [2], [0, 0, 0, 1, 1, 2], [0], [0]>} : vector<4x8x8xbf16>, vector<4x8x32xbf16>, vector<4x8x32xf32> -> vector<4x8x32xf32>
    "tpu.trace_stop"() : () -> ()
    %91 = vector.extract_strided_slice %90 {offsets = [0, 0, 0], sizes = [1, 8, 32], strides = [1, 1, 1]} : vector<4x8x32xf32> to vector<1x8x32xf32>
    %92 = vector.shape_cast %91 : vector<1x8x32xf32> to vector<8x32xf32>
    %93 = vector.extract_strided_slice %90 {offsets = [1, 0, 0], sizes = [1, 8, 32], strides = [1, 1, 1]} : vector<4x8x32xf32> to vector<1x8x32xf32>
    %94 = vector.shape_cast %93 : vector<1x8x32xf32> to vector<8x32xf32>
    %95 = arith.addf %92, %94 : vector<8x32xf32>
    %96 = vector.extract_strided_slice %90 {offsets = [2, 0, 0], sizes = [1, 8, 32], strides = [1, 1, 1]} : vector<4x8x32xf32> to vector<1x8x32xf32>
    %97 = vector.shape_cast %96 : vector<1x8x32xf32> to vector<8x32xf32>
    %98 = arith.addf %95, %97 : vector<8x32xf32>
    %99 = vector.extract_strided_slice %90 {offsets = [3, 0, 0], sizes = [1, 8, 32], strides = [1, 1, 1]} : vector<4x8x32xf32> to vector<1x8x32xf32>
    %100 = vector.shape_cast %99 : vector<1x8x32xf32> to vector<8x32xf32>
    %101 = arith.addf %98, %100 : vector<8x32xf32>
    %102 = arith.addf %44, %101 : vector<8x32xf32>
    %103 = arith.extf %50 : vector<1x32xbf16> to vector<1x32xf32>
    %104 = vector.broadcast %103 : vector<1x32xf32> to vector<8x32xf32>
    %105 = arith.addf %102, %104 : vector<8x32xf32>
    %cst_36 = arith.constant dense<0.000000e+00> : vector<8xf32>
    %106 = vector.multi_reduction <add>, %105, %cst_36 [1] : vector<8x32xf32> to vector<8xf32>
    %107 = vector.shape_cast %106 : vector<8xf32> to vector<8x1xf32>
    %cst_37 = arith.constant 3.200000e+01 : f32
    %108 = vector.broadcast %cst_37 : f32 to vector<8x1xf32>
    %109 = arith.divf %107, %108 : vector<8x1xf32>
    %110 = vector.broadcast %109 : vector<8x1xf32> to vector<8x32xf32>
    %111 = arith.subf %105, %110 : vector<8x32xf32>
    %112 = arith.mulf %111, %111 : vector<8x32xf32>
    %cst_38 = arith.constant dense<0.000000e+00> : vector<8xf32>
    %113 = vector.multi_reduction <add>, %112, %cst_38 [1] : vector<8x32xf32> to vector<8xf32>
    %114 = vector.shape_cast %113 : vector<8xf32> to vector<8x1xf32>
    %cst_39 = arith.constant 3.200000e+01 : f32
    %115 = vector.broadcast %cst_39 : f32 to vector<8x1xf32>
    %116 = arith.divf %114, %115 : vector<8x1xf32>
    %117 = vector.broadcast %109 : vector<8x1xf32> to vector<8x32xf32>
    %118 = arith.subf %105, %117 : vector<8x32xf32>
    %cst_40 = arith.constant 9.99999996E-13 : f32
    %119 = vector.broadcast %cst_40 : f32 to vector<8x1xf32>
    %120 = arith.addf %116, %119 : vector<8x1xf32>
    %121 = math.rsqrt %120 : vector<8x1xf32>
    %122 = vector.broadcast %121 : vector<8x1xf32> to vector<8x32xf32>
    %123 = arith.mulf %118, %122 : vector<8x32xf32>
    %124 = arith.extf %51 : vector<1x32xbf16> to vector<1x32xf32>
    %125 = vector.broadcast %124 : vector<1x32xf32> to vector<8x32xf32>
    %126 = arith.mulf %123, %125 : vector<8x32xf32>
    %127 = arith.extf %52 : vector<1x32xbf16> to vector<1x32xf32>
    %128 = vector.broadcast %127 : vector<1x32xf32> to vector<8x32xf32>
    %129 = arith.addf %126, %128 : vector<8x32xf32>
    %c0_41 = arith.constant 0 : index
    %c0_42 = arith.constant 0 : index
    %c0_43 = arith.constant 0 : index
    %130 = vector.load %arg8[%c0_41, %c0_42, %c0_43] : memref<2x32x64xbf16, #tpu.memory_space<vmem>>, vector<1x32x64xbf16>
    %131 = vector.shape_cast %130 : vector<1x32x64xbf16> to vector<32x64xbf16>
    %132 = arith.truncf %129 : vector<8x32xf32> to vector<8x32xbf16>
    %cst_44 = arith.constant dense<0.000000e+00> : vector<8x64xf32>
    %133 = tpu.matmul %132, %131, %cst_44 {dimension_numbers = #tpu.dot_dimension_numbers<[1], [0], [0], [1], [0, 0, 1, 1], [], []>} : vector<8x32xbf16>, vector<32x64xbf16>, vector<8x64xf32> -> vector<8x64xf32>
    %134 = arith.extf %54 : vector<1x64xbf16> to vector<1x64xf32>
    %135 = vector.broadcast %134 : vector<1x64xf32> to vector<8x64xf32>
    %136 = arith.addf %133, %135 : vector<8x64xf32>
    %137 = arith.mulf %136, %136 : vector<8x64xf32>
    %138 = arith.mulf %136, %137 : vector<8x64xf32>
    %cst_45 = arith.constant 4.471500e-02 : f32
    %139 = vector.broadcast %cst_45 : f32 to vector<8x64xf32>
    %140 = arith.mulf %139, %138 : vector<8x64xf32>
    %141 = arith.addf %136, %140 : vector<8x64xf32>
    %cst_46 = arith.constant 0.797884583 : f32
    %142 = vector.broadcast %cst_46 : f32 to vector<8x64xf32>
    %143 = arith.mulf %142, %141 : vector<8x64xf32>
    %144 = math.tanh %143 : vector<8x64xf32>
    %cst_47 = arith.constant 1.000000e+00 : f32
    %145 = vector.broadcast %cst_47 : f32 to vector<8x64xf32>
    %146 = arith.addf %145, %144 : vector<8x64xf32>
    %cst_48 = arith.constant 5.000000e-01 : f32
    %147 = vector.broadcast %cst_48 : f32 to vector<8x64xf32>
    %148 = arith.mulf %147, %146 : vector<8x64xf32>
    %149 = arith.mulf %136, %148 : vector<8x64xf32>
    %c0_49 = arith.constant 0 : index
    %c0_50 = arith.constant 0 : index
    %c0_51 = arith.constant 0 : index
    %150 = vector.load %arg9[%c0_49, %c0_50, %c0_51] : memref<2x64x32xbf16, #tpu.memory_space<vmem>>, vector<1x64x32xbf16>
    %151 = vector.shape_cast %150 : vector<1x64x32xbf16> to vector<64x32xbf16>
    %152 = arith.truncf %149 : vector<8x64xf32> to vector<8x64xbf16>
    %cst_52 = arith.constant dense<0.000000e+00> : vector<8x32xf32>
    %153 = tpu.matmul %152, %151, %cst_52 {dimension_numbers = #tpu.dot_dimension_numbers<[1], [0], [0], [1], [0, 0, 1, 1], [], []>} : vector<8x64xbf16>, vector<64x32xbf16>, vector<8x32xf32> -> vector<8x32xf32>
    %154 = arith.addf %129, %153 : vector<8x32xf32>
    %155 = arith.extf %55 : vector<1x32xbf16> to vector<1x32xf32>
    %156 = vector.broadcast %155 : vector<1x32xf32> to vector<8x32xf32>
    %157 = arith.addf %154, %156 : vector<8x32xf32>
    %cst_53 = arith.constant dense<0.000000e+00> : vector<8xf32>
    %158 = vector.multi_reduction <add>, %157, %cst_53 [1] : vector<8x32xf32> to vector<8xf32>
    %159 = vector.shape_cast %158 : vector<8xf32> to vector<8x1xf32>
    %cst_54 = arith.constant 3.200000e+01 : f32
    %160 = vector.broadcast %cst_54 : f32 to vector<8x1xf32>
    %161 = arith.divf %159, %160 : vector<8x1xf32>
    %162 = vector.broadcast %161 : vector<8x1xf32> to vector<8x32xf32>
    %163 = arith.subf %157, %162 : vector<8x32xf32>
    %164 = arith.mulf %163, %163 : vector<8x32xf32>
    %cst_55 = arith.constant dense<0.000000e+00> : vector<8xf32>
    %165 = vector.multi_reduction <add>, %164, %cst_55 [1] : vector<8x32xf32> to vector<8xf32>
    %166 = vector.shape_cast %165 : vector<8xf32> to vector<8x1xf32>
    %cst_56 = arith.constant 3.200000e+01 : f32
    %167 = vector.broadcast %cst_56 : f32 to vector<8x1xf32>
    %168 = arith.divf %166, %167 : vector<8x1xf32>
    %169 = vector.broadcast %161 : vector<8x1xf32> to vector<8x32xf32>
    %170 = arith.subf %157, %169 : vector<8x32xf32>
    %cst_57 = arith.constant 9.99999996E-13 : f32
    %171 = vector.broadcast %cst_57 : f32 to vector<8x1xf32>
    %172 = arith.addf %168, %171 : vector<8x1xf32>
    %173 = math.rsqrt %172 : vector<8x1xf32>
    %174 = vector.broadcast %173 : vector<8x1xf32> to vector<8x32xf32>
    %175 = arith.mulf %170, %174 : vector<8x32xf32>
    %176 = arith.extf %53 : vector<1x32xbf16> to vector<1x32xf32>
    %177 = vector.broadcast %176 : vector<1x32xf32> to vector<8x32xf32>
    %178 = arith.mulf %175, %177 : vector<8x32xf32>
    %179 = arith.extf %56 : vector<1x32xbf16> to vector<1x32xf32>
    %180 = vector.broadcast %179 : vector<1x32xf32> to vector<8x32xf32>
    %181 = arith.addf %178, %180 : vector<8x32xf32>
    %c1 = arith.constant 1 : index
    %c0_58 = arith.constant 0 : index
    %c0_59 = arith.constant 0 : index
    %182 = vector.load %arg10[%c1, %c0_58, %c0_59] : memref<2x1x256xbf16, #tpu.memory_space<vmem>>, vector<1x1x256xbf16>
    %183 = vector.shape_cast %182 : vector<1x1x256xbf16> to vector<1x256xbf16>
    %184 = vector.extract_strided_slice %183 {offsets = [0, 0], sizes = [1, 32], strides = [1, 1]} : vector<1x256xbf16> to vector<1x32xbf16>
    %185 = vector.extract_strided_slice %183 {offsets = [0, 32], sizes = [1, 32], strides = [1, 1]} : vector<1x256xbf16> to vector<1x32xbf16>
    %186 = vector.extract_strided_slice %183 {offsets = [0, 64], sizes = [1, 32], strides = [1, 1]} : vector<1x256xbf16> to vector<1x32xbf16>
    %187 = vector.extract_strided_slice %183 {offsets = [0, 96], sizes = [1, 32], strides = [1, 1]} : vector<1x256xbf16> to vector<1x32xbf16>
    %188 = vector.extract_strided_slice %183 {offsets = [0, 128], sizes = [1, 64], strides = [1, 1]} : vector<1x256xbf16> to vector<1x64xbf16>
    %189 = vector.extract_strided_slice %183 {offsets = [0, 192], sizes = [1, 32], strides = [1, 1]} : vector<1x256xbf16> to vector<1x32xbf16>
    %190 = vector.extract_strided_slice %183 {offsets = [0, 224], sizes = [1, 32], strides = [1, 1]} : vector<1x256xbf16> to vector<1x32xbf16>
    %191 = arith.truncf %181 : vector<8x32xf32> to vector<8x32xbf16>
    %192 = vector.shape_cast %191 : vector<8x32xbf16> to vector<1x8x32xbf16>
    %193 = vector.shape_cast %192 : vector<1x8x32xbf16> to vector<1x8x32xbf16>
    %194 = vector.broadcast %193 : vector<1x8x32xbf16> to vector<4x8x32xbf16>
    %c1_60 = arith.constant 1 : index
    %c0_61 = arith.constant 0 : index
    %c0_62 = arith.constant 0 : index
    %c0_63 = arith.constant 0 : index
    %195 = vector.load %arg5[%c1_60, %c0_61, %c0_62, %c0_63] : memref<2x4x32x24xbf16, #tpu.memory_space<vmem>>, vector<1x4x32x24xbf16>
    %196 = vector.shape_cast %195 : vector<1x4x32x24xbf16> to vector<4x32x24xbf16>
    "tpu.trace_start"() <{level = 10 : i32, message = "hsk,hkd->hsd"}> : () -> ()
    %cst_64 = arith.constant dense<0.000000e+00> : vector<4x8x24xf32>
    %197 = tpu.matmul %194, %196, %cst_64 {dimension_numbers = #tpu.dot_dimension_numbers<[2], [1], [1], [2], [0, 0, 0, 1, 1, 2], [0], [0]>} : vector<4x8x32xbf16>, vector<4x32x24xbf16>, vector<4x8x24xf32> -> vector<4x8x24xf32>
    "tpu.trace_stop"() : () -> ()
    %c1_65 = arith.constant 1 : index
    %c0_66 = arith.constant 0 : index
    %c0_67 = arith.constant 0 : index
    %c0_68 = arith.constant 0 : index
    %198 = vector.load %arg6[%c1_65, %c0_66, %c0_67, %c0_68] : memref<2x4x1x24xbf16, #tpu.memory_space<vmem>>, vector<1x4x1x24xbf16>
    %199 = vector.shape_cast %198 : vector<1x4x1x24xbf16> to vector<4x1x24xbf16>
    %200 = arith.extf %199 : vector<4x1x24xbf16> to vector<4x1x24xf32>
    %201 = vector.broadcast %200 : vector<4x1x24xf32> to vector<4x8x24xf32>
    %202 = arith.addf %197, %201 : vector<4x8x24xf32>
    %203 = arith.truncf %202 : vector<4x8x24xf32> to vector<4x8x24xbf16>
    %204 = vector.extract_strided_slice %203 {offsets = [0, 0, 0], sizes = [4, 8, 8], strides = [1, 1, 1]} : vector<4x8x24xbf16> to vector<4x8x8xbf16>
    %205 = vector.extract_strided_slice %203 {offsets = [0, 0, 8], sizes = [4, 8, 8], strides = [1, 1, 1]} : vector<4x8x24xbf16> to vector<4x8x8xbf16>
    %206 = vector.extract_strided_slice %203 {offsets = [0, 0, 16], sizes = [4, 8, 8], strides = [1, 1, 1]} : vector<4x8x24xbf16> to vector<4x8x8xbf16>
    "tpu.trace_start"() <{level = 10 : i32, message = "hqd,hkd->hqk"}> : () -> ()
    %cst_69 = arith.constant dense<0.000000e+00> : vector<4x8x8xf32>
    %207 = tpu.matmul %204, %205, %cst_69 {dimension_numbers = #tpu.dot_dimension_numbers<[2], [2], [1], [1], [0, 0, 0, 1, 1, 1], [0], [0]>} : vector<4x8x8xbf16>, vector<4x8x8xbf16>, vector<4x8x8xf32> -> vector<4x8x8xf32>
    "tpu.trace_stop"() : () -> ()
    %208 = arith.addf %207, %47 : vector<4x8x8xf32>
    %cst_70 = arith.constant dense<0xFF800000> : vector<4x8xf32>
    %209 = vector.multi_reduction <maximumf>, %208, %cst_70 [2] : vector<4x8x8xf32> to vector<4x8xf32>
    %210 = vector.shape_cast %209 : vector<4x8xf32> to vector<4x8x1xf32>
    %211 = vector.broadcast %210 : vector<4x8x1xf32> to vector<4x8x8xf32>
    %212 = arith.subf %208, %211 : vector<4x8x8xf32>
    %213 = math.exp %212 : vector<4x8x8xf32>
    %cst_71 = arith.constant dense<0.000000e+00> : vector<4x8xf32>
    %214 = vector.multi_reduction <add>, %213, %cst_71 [2] : vector<4x8x8xf32> to vector<4x8xf32>
    %215 = vector.shape_cast %214 : vector<4x8xf32> to vector<4x8x1xf32>
    %216 = tpu.reciprocal %215 {approx = true} : vector<4x8x1xf32> -> vector<4x8x1xf32>
    %217 = vector.broadcast %216 : vector<4x8x1xf32> to vector<4x8x8xf32>
    %218 = arith.mulf %213, %217 : vector<4x8x8xf32>
    %219 = arith.truncf %218 : vector<4x8x8xf32> to vector<4x8x8xbf16>
    "tpu.trace_start"() <{level = 10 : i32, message = "hqk,hkd->hqd"}> : () -> ()
    %cst_72 = arith.constant dense<0.000000e+00> : vector<4x8x8xf32>
    %220 = tpu.matmul %219, %206, %cst_72 {dimension_numbers = #tpu.dot_dimension_numbers<[2], [1], [1], [2], [0, 0, 0, 1, 1, 2], [0], [0]>} : vector<4x8x8xbf16>, vector<4x8x8xbf16>, vector<4x8x8xf32> -> vector<4x8x8xf32>
    "tpu.trace_stop"() : () -> ()
    %221 = arith.truncf %220 : vector<4x8x8xf32> to vector<4x8x8xbf16>
    %c1_73 = arith.constant 1 : index
    %c0_74 = arith.constant 0 : index
    %c0_75 = arith.constant 0 : index
    %c0_76 = arith.constant 0 : index
    %222 = vector.load %arg7[%c1_73, %c0_74, %c0_75, %c0_76] : memref<2x4x8x32xbf16, #tpu.memory_space<vmem>>, vector<1x4x8x32xbf16>
    %223 = vector.shape_cast %222 : vector<1x4x8x32xbf16> to vector<4x8x32xbf16>
    "tpu.trace_start"() <{level = 10 : i32, message = "hqd,hdo->hqo"}> : () -> ()
    %cst_77 = arith.constant dense<0.000000e+00> : vector<4x8x32xf32>
    %224 = tpu.matmul %221, %223, %cst_77 {dimension_numbers = #tpu.dot_dimension_numbers<[2], [1], [1], [2], [0, 0, 0, 1, 1, 2], [0], [0]>} : vector<4x8x8xbf16>, vector<4x8x32xbf16>, vector<4x8x32xf32> -> vector<4x8x32xf32>
    "tpu.trace_stop"() : () -> ()
    %225 = vector.extract_strided_slice %224 {offsets = [0, 0, 0], sizes = [1, 8, 32], strides = [1, 1, 1]} : vector<4x8x32xf32> to vector<1x8x32xf32>
    %226 = vector.shape_cast %225 : vector<1x8x32xf32> to vector<8x32xf32>
    %227 = vector.extract_strided_slice %224 {offsets = [1, 0, 0], sizes = [1, 8, 32], strides = [1, 1, 1]} : vector<4x8x32xf32> to vector<1x8x32xf32>
    %228 = vector.shape_cast %227 : vector<1x8x32xf32> to vector<8x32xf32>
    %229 = arith.addf %226, %228 : vector<8x32xf32>
    %230 = vector.extract_strided_slice %224 {offsets = [2, 0, 0], sizes = [1, 8, 32], strides = [1, 1, 1]} : vector<4x8x32xf32> to vector<1x8x32xf32>
    %231 = vector.shape_cast %230 : vector<1x8x32xf32> to vector<8x32xf32>
    %232 = arith.addf %229, %231 : vector<8x32xf32>
    %233 = vector.extract_strided_slice %224 {offsets = [3, 0, 0], sizes = [1, 8, 32], strides = [1, 1, 1]} : vector<4x8x32xf32> to vector<1x8x32xf32>
    %234 = vector.shape_cast %233 : vector<1x8x32xf32> to vector<8x32xf32>
    %235 = arith.addf %232, %234 : vector<8x32xf32>
    %236 = arith.addf %181, %235 : vector<8x32xf32>
    %237 = arith.extf %184 : vector<1x32xbf16> to vector<1x32xf32>
    %238 = vector.broadcast %237 : vector<1x32xf32> to vector<8x32xf32>
    %239 = arith.addf %236, %238 : vector<8x32xf32>
    %cst_78 = arith.constant dense<0.000000e+00> : vector<8xf32>
    %240 = vector.multi_reduction <add>, %239, %cst_78 [1] : vector<8x32xf32> to vector<8xf32>
    %241 = vector.shape_cast %240 : vector<8xf32> to vector<8x1xf32>
    %cst_79 = arith.constant 3.200000e+01 : f32
    %242 = vector.broadcast %cst_79 : f32 to vector<8x1xf32>
    %243 = arith.divf %241, %242 : vector<8x1xf32>
    %244 = vector.broadcast %243 : vector<8x1xf32> to vector<8x32xf32>
    %245 = arith.subf %239, %244 : vector<8x32xf32>
    %246 = arith.mulf %245, %245 : vector<8x32xf32>
    %cst_80 = arith.constant dense<0.000000e+00> : vector<8xf32>
    %247 = vector.multi_reduction <add>, %246, %cst_80 [1] : vector<8x32xf32> to vector<8xf32>
    %248 = vector.shape_cast %247 : vector<8xf32> to vector<8x1xf32>
    %cst_81 = arith.constant 3.200000e+01 : f32
    %249 = vector.broadcast %cst_81 : f32 to vector<8x1xf32>
    %250 = arith.divf %248, %249 : vector<8x1xf32>
    %251 = vector.broadcast %243 : vector<8x1xf32> to vector<8x32xf32>
    %252 = arith.subf %239, %251 : vector<8x32xf32>
    %cst_82 = arith.constant 9.99999996E-13 : f32
    %253 = vector.broadcast %cst_82 : f32 to vector<8x1xf32>
    %254 = arith.addf %250, %253 : vector<8x1xf32>
    %255 = math.rsqrt %254 : vector<8x1xf32>
    %256 = vector.broadcast %255 : vector<8x1xf32> to vector<8x32xf32>
    %257 = arith.mulf %252, %256 : vector<8x32xf32>
    %258 = arith.extf %185 : vector<1x32xbf16> to vector<1x32xf32>
    %259 = vector.broadcast %258 : vector<1x32xf32> to vector<8x32xf32>
    %260 = arith.mulf %257, %259 : vector<8x32xf32>
    %261 = arith.extf %186 : vector<1x32xbf16> to vector<1x32xf32>
    %262 = vector.broadcast %261 : vector<1x32xf32> to vector<8x32xf32>
    %263 = arith.addf %260, %262 : vector<8x32xf32>
    %c1_83 = arith.constant 1 : index
    %c0_84 = arith.constant 0 : index
    %c0_85 = arith.constant 0 : index
    %264 = vector.load %arg8[%c1_83, %c0_84, %c0_85] : memref<2x32x64xbf16, #tpu.memory_space<vmem>>, vector<1x32x64xbf16>
    %265 = vector.shape_cast %264 : vector<1x32x64xbf16> to vector<32x64xbf16>
    %266 = arith.truncf %263 : vector<8x32xf32> to vector<8x32xbf16>
    %cst_86 = arith.constant dense<0.000000e+00> : vector<8x64xf32>
    %267 = tpu.matmul %266, %265, %cst_86 {dimension_numbers = #tpu.dot_dimension_numbers<[1], [0], [0], [1], [0, 0, 1, 1], [], []>} : vector<8x32xbf16>, vector<32x64xbf16>, vector<8x64xf32> -> vector<8x64xf32>
    %268 = arith.extf %188 : vector<1x64xbf16> to vector<1x64xf32>
    %269 = vector.broadcast %268 : vector<1x64xf32> to vector<8x64xf32>
    %270 = arith.addf %267, %269 : vector<8x64xf32>
    %271 = arith.mulf %270, %270 : vector<8x64xf32>
    %272 = arith.mulf %270, %271 : vector<8x64xf32>
    %cst_87 = arith.constant 4.471500e-02 : f32
    %273 = vector.broadcast %cst_87 : f32 to vector<8x64xf32>
    %274 = arith.mulf %273, %272 : vector<8x64xf32>
    %275 = arith.addf %270, %274 : vector<8x64xf32>
    %cst_88 = arith.constant 0.797884583 : f32
    %276 = vector.broadcast %cst_88 : f32 to vector<8x64xf32>
    %277 = arith.mulf %276, %275 : vector<8x64xf32>
    %278 = math.tanh %277 : vector<8x64xf32>
    %cst_89 = arith.constant 1.000000e+00 : f32
    %279 = vector.broadcast %cst_89 : f32 to vector<8x64xf32>
    %280 = arith.addf %279, %278 : vector<8x64xf32>
    %cst_90 = arith.constant 5.000000e-01 : f32
    %281 = vector.broadcast %cst_90 : f32 to vector<8x64xf32>
    %282 = arith.mulf %281, %280 : vector<8x64xf32>
    %283 = arith.mulf %270, %282 : vector<8x64xf32>
    %c1_91 = arith.constant 1 : index
    %c0_92 = arith.constant 0 : index
    %c0_93 = arith.constant 0 : index
    %284 = vector.load %arg9[%c1_91, %c0_92, %c0_93] : memref<2x64x32xbf16, #tpu.memory_space<vmem>>, vector<1x64x32xbf16>
    %285 = vector.shape_cast %284 : vector<1x64x32xbf16> to vector<64x32xbf16>
    %286 = arith.truncf %283 : vector<8x64xf32> to vector<8x64xbf16>
    %cst_94 = arith.constant dense<0.000000e+00> : vector<8x32xf32>
    %287 = tpu.matmul %286, %285, %cst_94 {dimension_numbers = #tpu.dot_dimension_numbers<[1], [0], [0], [1], [0, 0, 1, 1], [], []>} : vector<8x64xbf16>, vector<64x32xbf16>, vector<8x32xf32> -> vector<8x32xf32>
    %288 = arith.addf %263, %287 : vector<8x32xf32>
    %289 = arith.extf %189 : vector<1x32xbf16> to vector<1x32xf32>
    %290 = vector.broadcast %289 : vector<1x32xf32> to vector<8x32xf32>
    %291 = arith.addf %288, %290 : vector<8x32xf32>
    %cst_95 = arith.constant dense<0.000000e+00> : vector<8xf32>
    %292 = vector.multi_reduction <add>, %291, %cst_95 [1] : vector<8x32xf32> to vector<8xf32>
    %293 = vector.shape_cast %292 : vector<8xf32> to vector<8x1xf32>
    %cst_96 = arith.constant 3.200000e+01 : f32
    %294 = vector.broadcast %cst_96 : f32 to vector<8x1xf32>
    %295 = arith.divf %293, %294 : vector<8x1xf32>
    %296 = vector.broadcast %295 : vector<8x1xf32> to vector<8x32xf32>
    %297 = arith.subf %291, %296 : vector<8x32xf32>
    %298 = arith.mulf %297, %297 : vector<8x32xf32>
    %cst_97 = arith.constant dense<0.000000e+00> : vector<8xf32>
    %299 = vector.multi_reduction <add>, %298, %cst_97 [1] : vector<8x32xf32> to vector<8xf32>
    %300 = vector.shape_cast %299 : vector<8xf32> to vector<8x1xf32>
    %cst_98 = arith.constant 3.200000e+01 : f32
    %301 = vector.broadcast %cst_98 : f32 to vector<8x1xf32>
    %302 = arith.divf %300, %301 : vector<8x1xf32>
    %303 = vector.broadcast %295 : vector<8x1xf32> to vector<8x32xf32>
    %304 = arith.subf %291, %303 : vector<8x32xf32>
    %cst_99 = arith.constant 9.99999996E-13 : f32
    %305 = vector.broadcast %cst_99 : f32 to vector<8x1xf32>
    %306 = arith.addf %302, %305 : vector<8x1xf32>
    %307 = math.rsqrt %306 : vector<8x1xf32>
    %308 = vector.broadcast %307 : vector<8x1xf32> to vector<8x32xf32>
    %309 = arith.mulf %304, %308 : vector<8x32xf32>
    %310 = arith.extf %187 : vector<1x32xbf16> to vector<1x32xf32>
    %311 = vector.broadcast %310 : vector<1x32xf32> to vector<8x32xf32>
    %312 = arith.mulf %309, %311 : vector<8x32xf32>
    %313 = arith.extf %190 : vector<1x32xbf16> to vector<1x32xf32>
    %314 = vector.broadcast %313 : vector<1x32xf32> to vector<8x32xf32>
    %315 = arith.addf %312, %314 : vector<8x32xf32>
    %316 = vector.extract_strided_slice %315 {offsets = [0, 0], sizes = [1, 32], strides = [1, 1]} : vector<8x32xf32> to vector<1x32xf32>
    %c0_100 = arith.constant 0 : index
    %c0_101 = arith.constant 0 : index
    %317 = vector.load %arg11[%c0_100, %c0_101] : memref<32x256xbf16, #tpu.memory_space<vmem>>, vector<32x32xbf16>
    %318 = arith.truncf %316 : vector<1x32xf32> to vector<1x32xbf16>
    %cst_102 = arith.constant dense<0.000000e+00> : vector<1x32xf32>
    %319 = tpu.matmul %318, %317, %cst_102 {dimension_numbers = #tpu.dot_dimension_numbers<[1], [0], [0], [1], [0, 0, 1, 1], [], []>} : vector<1x32xbf16>, vector<32x32xbf16>, vector<1x32xf32> -> vector<1x32xf32>
    %320 = arith.extf %3 : vector<1x32xbf16> to vector<1x32xf32>
    %321 = arith.addf %319, %320 : vector<1x32xf32>
    %322 = math.tanh %321 : vector<1x32xf32>
    %c0_103 = arith.constant 0 : index
    %c128_104 = arith.constant 128 : index
    %323 = vector.load %arg11[%c0_103, %c128_104] : memref<32x256xbf16, #tpu.memory_space<vmem>>, vector<32x128xbf16>
    %324 = arith.truncf %322 : vector<1x32xf32> to vector<1x32xbf16>
    %cst_105 = arith.constant dense<0.000000e+00> : vector<1x128xf32>
    %325 = tpu.matmul %324, %323, %cst_105 {dimension_numbers = #tpu.dot_dimension_numbers<[1], [0], [0], [1], [0, 0, 1, 1], [], []>} : vector<1x32xbf16>, vector<32x128xbf16>, vector<1x128xf32> -> vector<1x128xf32>
    %326 = arith.extf %4 : vector<1x128xbf16> to vector<1x128xf32>
    %327 = arith.addf %325, %326 : vector<1x128xf32>
    %328 = vector.shape_cast %327 : vector<1x128xf32> to vector<1x1x128xf32>
    %c0_106 = arith.constant 0 : index
    %c0_107 = arith.constant 0 : index
    %c0_108 = arith.constant 0 : index
    %329 = vector.load %arg12[%c0_106, %c0_107, %c0_108] : memref<1x1x128xf32, #tpu.memory_space<vmem>>, vector<1x1x128xf32>
    tpu.vector_store %arg12[%c0_106, %c0_107, %c0_108], %328 {strides = array<i32>} : memref<1x1x128xf32, #tpu.memory_space<vmem>>, vector<1x1x128xf32>,
    return
  }
  func.func @transform_0(%arg0: i32) -> (i32, i32) {
    %c0_i32 = arith.constant 0 : i32
    %c0_i32_0 = arith.constant 0 : i32
    return %arg0, %c0_i32 : i32, i32
  }
  func.func @transform_1(%arg0: i32) -> (i32, i32, i32) {
    %c0_i32 = arith.constant 0 : i32
    %c0_i32_0 = arith.constant 0 : i32
    %c0_i32_1 = arith.constant 0 : i32
    return %arg0, %c0_i32, %c0_i32_0 : i32, i32, i32
  }
  func.func @transform_2(%arg0: i32) -> (i32, i32) {
    %c0_i32 = arith.constant 0 : i32
    %c0_i32_0 = arith.constant 0 : i32
    %c0_i32_1 = arith.constant 0 : i32
    return %c0_i32, %c0_i32_0 : i32, i32
  }
  func.func @transform_3(%arg0: i32) -> (i32, i32) {
    %c0_i32 = arith.constant 0 : i32
    %c0_i32_0 = arith.constant 0 : i32
    %c0_i32_1 = arith.constant 0 : i32
    return %c0_i32, %c0_i32_0 : i32, i32
  }
  func.func @transform_4(%arg0: i32) -> (i32, i32, i32, i32) {
    %c0_i32 = arith.constant 0 : i32
    %c0_i32_0 = arith.constant 0 : i32
    %c0_i32_1 = arith.constant 0 : i32
    %c0_i32_2 = arith.constant 0 : i32
    %c0_i32_3 = arith.constant 0 : i32
    return %c0_i32, %c0_i32_0, %c0_i32_1, %c0_i32_2 : i32, i32, i32, i32
  }
  func.func @transform_5(%arg0: i32) -> (i32, i32, i32, i32) {
    %c0_i32 = arith.constant 0 : i32
    %c0_i32_0 = arith.constant 0 : i32
    %c0_i32_1 = arith.constant 0 : i32
    %c0_i32_2 = arith.constant 0 : i32
    %c0_i32_3 = arith.constant 0 : i32
    return %c0_i32, %c0_i32_0, %c0_i32_1, %c0_i32_2 : i32, i32, i32, i32
  }
  func.func @transform_6(%arg0: i32) -> (i32, i32, i32, i32) {
    %c0_i32 = arith.constant 0 : i32
    %c0_i32_0 = arith.constant 0 : i32
    %c0_i32_1 = arith.constant 0 : i32
    %c0_i32_2 = arith.constant 0 : i32
    %c0_i32_3 = arith.constant 0 : i32
    return %c0_i32, %c0_i32_0, %c0_i32_1, %c0_i32_2 : i32, i32, i32, i32
  }
  func.func @transform_7(%arg0: i32) -> (i32, i32, i32) {
    %c0_i32 = arith.constant 0 : i32
    %c0_i32_0 = arith.constant 0 : i32
    %c0_i32_1 = arith.constant 0 : i32
    %c0_i32_2 = arith.constant 0 : i32
    return %c0_i32, %c0_i32_0, %c0_i32_1 : i32, i32, i32
  }
  func.func @transform_8(%arg0: i32) -> (i32, i32, i32) {
    %c0_i32 = arith.constant 0 : i32
    %c0_i32_0 = arith.constant 0 : i32
    %c0_i32_1 = arith.constant 0 : i32
    %c0_i32_2 = arith.constant 0 : i32
    return %c0_i32, %c0_i32_0, %c0_i32_1 : i32, i32, i32
  }
  func.func @transform_9(%arg0: i32) -> (i32, i32, i32) {
    %c0_i32 = arith.constant 0 : i32
    %c0_i32_0 = arith.constant 0 : i32
    %c0_i32_1 = arith.constant 0 : i32
    %c0_i32_2 = arith.constant 0 : i32
    return %c0_i32, %c0_i32_0, %c0_i32_1 : i32, i32, i32
  }
  func.func @transform_10(%arg0: i32) -> (i32, i32) {
    %c0_i32 = arith.constant 0 : i32
    %c0_i32_0 = arith.constant 0 : i32
    %c0_i32_1 = arith.constant 0 : i32
    return %c0_i32, %c0_i32_0 : i32, i32
  }
  func.func @transform_11(%arg0: i32) -> (i32, i32, i32) {
    %c0_i32 = arith.constant 0 : i32
    %c0_i32_0 = arith.constant 0 : i32
    %c0_i32_1 = arith.constant 0 : i32
    return %arg0, %c0_i32, %c0_i32_0 : i32, i32, i32
  }
}

</mosaic_0001>

<bundles_post_ra>
// kernel: sentiment_classifier_forward.1
= control target key start
LH: loop header
LB: loop body
LE: loop exit
PB: predicated region body
PF: predicated region fallthrough
CT: control target
= control target key end

     0   :  { %s4432_s0 = inlined_call_operand.vmem [shape: s32[16,1], index: 0, kind: input, shape index: {}]   ;;  %s4433_s1 = inlined_call_operand.vmem [shape: f32[2,1,8], index: 1, kind: input, shape index: {}]   ;;  %s4434_s2 = inlined_call_operand.vmem [shape: bf16[146,32], index: 2, kind: input, shape index: {}]   ;;  %s4435_s3 = inlined_call_operand.vmem [shape: bf16[1,256], index: 3, kind: input, shape index: {}]   ;;  %s4436_s4 = inlined_call_operand.vmem [shape: bf16[2,4,32,24], index: 4, kind: input, shape index: {}]   ;;  %s4437_s5 = inlined_call_operand.vmem [shape: bf16[2,4,1,24], index: 5, kind: input, shape index: {}]   ;;  %s4438_s6 = inlined_call_operand.vmem [shape: bf16[2,4,8,32], index: 6, kind: input, shape index: {}]   ;;  %s4439_s7 = inlined_call_operand.vmem [shape: bf16[2,32,64], index: 7, kind: input, shape index: {}]   ;;  %s4440_s8 = inlined_call_operand.vmem [shape: bf16[2,64,32], index: 8, kind: input, shape index: {}]   ;;  %s4441_s9 = inlined_call_operand.vmem [shape: bf16[2,1,256], index: 9, kind: input, shape index: {}]   ;;  %s4442_s10 = inlined_call_operand.vmem [shape: bf16[32,256], index: 10, kind: input, shape index: {}]   ;;  %s4443_s11 = inlined_call_operand.hbm [shape: f32[2,1,128], index: 11, kind: output, shape index: {}]  }
   0x1   :  { %4447 = sst [smem:[#allocation5_spill]] %s4432_s0 }
   0x2   :  { %16 = vsyncpa [#allocation3], 0 }
   0x3   :  { %18 = vsyncpa [#allocation3 + $0x1], 0  ;;  %s3773_s17 = smov 0   ;;  %s3775_s18 = smov 0  }
   0x4   :  { %s3777_s19 = smov 0   ;;  %s3779_s20 = smov 0  }
   0x5 LB: > { %s3794_s21 = sadd.s32 4294967295, %s3701_s20   ;;  %s2989_s22 = sadd.s32 4294967294, %s3701_s20   ;;  %s3701_s20 = sphi %s3779_s20, %s4456_s20   ;;  %s3697_s19 = sphi %s3777_s19, %s4455_s19   ;;  %s3693_s18 = sphi %s3775_s18, %s4454_s18   ;;  %s3689_s17 = sphi %s3773_s17, %s4453_s17  }
   0x6   : > { %s3798_s23 = sadd.s32 1, %s3701_s20   ;;  %s272_s24 = sadd.s32 1, %s3697_s19 }
   0x7   : > { %s269_s25 = ssub.s32 %s3701_s20, %s3798_s23  ;;  %p282_p0 = scmp.ne.s32.totalorder %s3697_s19, %s3693_s18 }
   0x8   : > { %p270_p1 = scmp.eq.s32.totalorder %s269_s25, 0  ;;  %p283_p2 = scmp.eq.s32.totalorder %s3794_s21, 1 }
   0x9   : > { %p288_p3 = scmp.ne.s32.totalorder %s3693_s18, %s3689_s17  ;;  %p289_p4 = scmp.eq.s32.totalorder %s2989_s22, 1 }
   0xa   : > { %s3809_s26 = scalar_select %p270_p1, %s3697_s19, %s272_s24  }
   0xb   : > { %p3811_p5 = por %p283_p2, %p282_p0  ;;  %p3815_p6 = por %p289_p4, %p288_p3 }
   0xc   : > { %p2992_p7 = scmp.ge.s32.totalorder %s3701_s20, 1  ;;  %p347_p8 = scmp.lt.s32.totalorder %s3701_s20, 3 }
   0xe   : > { %p348_p9 = pnand %p2992_p7, %p347_p8 }
   0xf   : > { %p388_p10 = scmp.lt.s32.totalorder (!%p348_p9), %s3794_s21, 1  ;;  %s4450_s0 = sld [smem:[#allocation5_spill]] (!%p348_p9) }
  0x10   : > { %351 = sbr.rel (%p348_p9) target bundleno = 5654 (0x1616), region = 64  ;;  %s4446_s30 = smov (!%p348_p9), 96  }
  0x11   : > { %s4444_s25 = smov (!%p348_p9), 64   ;;  %s4452_s13 = smov (!%p348_p9), 64  }
  0x12   : > { %s386_s22 = sand.u32 (!%p348_p9), 1, %s3693_s18   ;;  %s3113_s29 = sshll.u32 (!%p348_p9), %s3794_s21, 4 }
  0x13   : > { %s2913_s16 = scalar_lea.sflag (!%p348_p9), [#allocation3], %s386_s22 }
  0x15   : > { %v3552_v0 = vld [vmem:[%s4434_s2 + $0x38] sm:$0xff]   ;;  %v3703_v1 = vmov 0   ;;  %v3704_v2 = vmov 0.0   ;;  %s3827_s12 = scalar_select %p388_p10, %s3794_s21, 1  ;;  %v3553_v3 = vld [vmem:[%s4434_s2 + $0x30] sm:$0xff]   ;;  %v3554_v5 = vld [vmem:[%s4434_s2 + $0x28] sm:$0xff]   ;;  %v398_v11 = vlaneseq }
  0x16   : > { %3551 = vset.pattern.permute.xlu0 %v3703_v1  ;;  %3219 = vmatprep.subr.bf16.mxu0 %v3704_v2  ;;  %vm3705_vm0 = vmmov 0   ;;  %v3555_v6 = vld [vmem:[%s4434_s2 + $0x20] sm:$0xff]   ;;  %v3556_v7 = vld [vmem:[%s4434_s2 + $0x18] sm:$0xff]   ;;  %v3557_v8 = vld [vmem:[%s4434_s2 + $0x10] sm:$0xff]   ;;  %v3706_v14 = vmov 1.0|1.0  }
  0x17   : > { %3220 = vmatpush3.bf16.msra.mxu0 %v3552_v0  ;;  %3239 = vmatprep.subr.bf16.mxu1 %v3704_v2  ;;  %s2993_s15 = sshll.u32 %s3827_s12, 3  ;;  %v3558_v9 = vld [vmem:[%s4434_s2 + $0x8] sm:$0xff]   ;;  %v3559_v10 = vld [vmem:[%s4434_s2] sm:$0xff]   ;;  %v399_v12 = vand.u32 127, %v398_v11  ;;  %v516_v15 = vshrl.u32 %v398_v11, 7  ;;  %vm520_vm3 = vcmask 261120   ;;  %s394_s14 = scalar_lea.vmem %s4433_s1, %s3827_s12 }
  0x18   : > { %3221 = vmatprep.subr.bf16.mxu0 %v3704_v2  ;;  %s391_s24 = scalar_lea.vmem %s4450_s0, %s2993_s15  ;;  %3235 = vmatprep.mubr.msk.bf16.mxu0 %vm3705_vm0, %v3704_v2  ;;  %v424_v16 = vld [vmem:[%s4434_s2 + $0x48] sm:$0x1]  ;;  %v423_v17 = vld [vmem:[%s4434_s2 + $0x40] sm:$0xf]  ;;  %v3562_v47 = vld [vmem:[%s4436_s4 + $0x18] sm:$0xff]   ;;  %s3708_s15 = smov 120  }
  0x19   : > { %v397_v4 = vld [vmem:[%s391_s24] sm:$0xff]  ;;  %3243 = vmatprep.mubr.msk.bf16.mxu1 %vm3705_vm0, %v3704_v2  ;;  %v3875_v18 = vsub.s32 0, %v516_v15  ;;  %v514_v19 = vunpack.c.l.bf16 %v424_v16  ;;  %v425_v20 = vunpack.c.l.bf16 %v423_v17  ;;  %v3560_v37 = vld [vmem:[%s4436_s4 + $0x8] sm:$0xff]   ;;  %v3563_v49 = vld [vmem:[%s4436_s4 + $0x10] sm:$0xff]   ;;  %vm813_vm4 = vcmask 64512   ;;  %s3709_s12 = smov 112  }
  0x1a   : > { %401 = vperm.xlu0 %3551, %v397_v4   ;;  %v396_v34 = vld [vmem:[%s4435_s3] sm:$0x3]  ;;  %3240 = vmatpush3.bf16.msra.mxu1 %v3560_v37  ;;  %v3564_v50 = vld [vmem:[%s4436_s4 + $0x28] sm:$0xff]   ;;  %v3566_v52 = vld [vmem:[%s4436_s4 + $0x38] sm:$0xff]   ;;  %vm1060_vm5 = vcmask 1043456   ;;  %vm1582_vm6 = vcmask 523264  }
  0x1b   : > { %3222 = vmatpush3.bf16.msra.mxu0 %v3553_v3  ;;  %v518_v21 = vrot.slane %v514_v19, %v3875_v18  ;;  %v535_v35 = vunpack.c.l.bf16 %v396_v34  ;;  %3241 = vmatprep.subr.bf16.mxu1 %v3704_v2  ;;  %v3561_v38 = vld [vmem:[%s4436_s4] sm:$0xff]   ;;  %v3567_v53 = vld [vmem:[%s4436_s4 + $0x30] sm:$0xff]   ;;  %s3712_s21 = smov [#allocation2]  }
  0x1c   : > { %3223 = vmatprep.subr.bf16.mxu0 %v3704_v2  ;;  %v3565_v51 = vld [vmem:[%s4436_s4 + $0x20] sm:$0xff]  }
  0x1d   : > { %v3884_v36 = vrot.slane %v535_v35, %v3875_v18  ;;  %v571_v54 = vld [vmem:[%s4437_s5] sm:$0x1]  ;;  %v572_v57 = vld [vmem:[%s4437_s5 + $0x1] sm:$0x1]  ;;  %v573_v3 = vld [vmem:[%s4437_s5 + $0x2] sm:$0x1] }
  0x1e   : > { %3242 = vmatpush3.bf16.msra.mxu1 %v3561_v38  ;;  %v575_v55 = vunpack.c.l.bf16 %v571_v54  ;;  %v576_v60 = vunpack.c.l.bf16 %v572_v57  ;;  %v3997_v37 = vld [vmem:[%s394_s14] ss:$0 sm:$0xff]  ;;  %s4391_s14 = scalar_lea.hbm %s4443_s11, %s3113_s29 }
  0x1f   : > { %3224 = vmatpush3.bf16.msra.mxu0 %v3554_v5  ;;  %3247 = vmatprep.subr.bf16.mxu1 %v3704_v2 }
  0x20   : > { %3225 = vmatprep.subr.bf16.mxu0 %v3704_v2  ;;  %v582_v56 = vrot.slane %v575_v55, %v3875_v18  ;;  %v586_v0 = vrot.slane %v576_v60, %v3875_v18 }
  0x23   : > { %3226 = vmatpush3.bf16.msra.mxu0 %v3555_v6  ;;  %v577_v6 = vunpack.c.l.bf16 %v573_v3 }
  0x24   : > { %3227 = vmatprep.subr.bf16.mxu0 %v3704_v2 }
  0x27   : > { %3228 = vmatpush3.bf16.msra.mxu0 %v3556_v7 }
  0x28   : > { %3229 = vmatprep.subr.bf16.mxu0 %v3704_v2 }
  0x2b   : > { %3230 = vmatpush3.bf16.msra.mxu0 %v3557_v8 }
  0x2c   : > { %3231 = vmatprep.subr.bf16.mxu0 %v3704_v2 }
  0x2f   : > { %3232 = vmatpush3.bf16.msra.mxu0 %v3558_v9 }
  0x30   : > { %3233 = vmatprep.subr.bf16.mxu0 %v3704_v2 }
  0x33   : > { %3234 = vmatpush3.bf16.msra.mxu0 %v3559_v10  ;;  %v590_v10 = vrot.slane %v577_v6, %v3875_v18 }
  0x34   : > { %3271 = vmatprep.subr.bf16.mxu0 %v3704_v2 }
  0x95   : > { %v402_v13 = vpop.permute.xlu0 %401 }
  0x96   : > { %vm403_vm1 = vcmp.eq.s32.totalorder %v402_v13, %v399_v12  ;;  %v574_v12 = vld [vmem:[%s4437_s5 + $0x3] sm:$0x1] }
  0x97   : > { %vm3003_vm2 = vmpackc.low %vm403_vm1, %vm403_vm1  ;;  %v578_v15 = vunpack.c.l.bf16 %v574_v12 }
  0x98   : > { %3236 = vmatmul.mubr.msk.bf16.vlgmr.msra.gmra.mxu0 %vm3003_vm2, %v3706_v14 }
  0x99   : > { %3273 = vmatprep.mubr.msk.bf16.mxu0 %vm3705_vm0, %v3704_v2 }
 0x158   : > { %v508_v22 = vpop.f32.mrf.mxu0 }
 0x159   : > { %v509_v23 = vadd.f32 %v508_v22, %v425_v20  ;;  %v594_v20 = vrot.slane %v578_v15, %v3875_v18 }
 0x15a   : > { %v3237_v24 = vpop.f32.mrf.mxu0 }
 0x15b   : > { %v519_v25 = vadd.f32 %v518_v21, %v509_v23 }
 0x15c   : > { %v511_v26 = vpop.f32.mrf.mxu0 }
 0x15d   : > { %v521_v27 = vsel %vm520_vm3, %v519_v25, 0.0 }
 0x15e   : > { %522 = vadd.xlane.f32.xlu0 %v521_v27  ;;  %v3238_v28 = vpop.f32.mrf.mxu0 }
 0x1e7   : > { %v523_v29 = vpop.xlane.xlu0 %522 }
 0x1e8   : > { %v525_v30 = vmul.f32 0.03125, %v523_v29 }
 0x1ea   : > { %v526_v31 = vsub.f32 %v519_v25, %v525_v30 }
 0x1ec   : > { %v527_v32 = vmul.f32 %v526_v31, %v526_v31 }
 0x1ee   : > { %v528_v33 = vsel %vm520_vm3, %v527_v32, 0.0 }
 0x1ef   : > { %529 = vadd.xlane.f32.xlu1 %v528_v33 }
 0x200   : > { %542 = vrot.lane.b32.xlu1 %v3884_v36, %s4446_s30 }
 0x278   : > { %v530_v39 = vpop.xlane.xlu1 %529 }
 0x279   : > { %v531_v40 = vmul.f32 0.03125, %v530_v39 }
 0x27b   : > { %v532_v41 = vadd.f32 1e-12, %v531_v40 }
 0x27c   : > { %v543_v44 = vpop.permute.xlu1 %542 }
 0x27d   : > { %3592 = vrsqrt.f32 %v532_v41 }
 0x28a   : > { %v3593_v42 = vpop.eup %3592 }
 0x28b   : > { %v534_v43 = vmul.f32 %v3593_v42, %v526_v31 }
 0x28d   : > { %v540_v45 = vmul.f32 %v3884_v36, %v534_v43 }
 0x28f   : > { %v3897_v46 = vadd.f32 %v543_v44, %v540_v45 }
 0x291   : > { %v554_v48 = vpack.c.bf16 %v3897_v46, %v3897_v46 }
 0x293   : > { %3244 = vmatmul.mubr.msk.bf16.vlgmr.msra.gmra.mxu1 %vm520_vm3, %v554_v48 }
 0x294   : > { %3248 = vmatpush3.bf16.msra.mxu1 %v3562_v47  ;;  %3251 = vmatprep.mubr.msk.bf16.mxu1 %vm3705_vm0, %v3704_v2 }
 0x295   : > { %3249 = vmatprep.subr.bf16.mxu1 %v3704_v2 }
 0x298   : > { %3250 = vmatpush3.bf16.msra.mxu1 %v3563_v49 }
 0x299   : > { %3255 = vmatprep.subr.bf16.mxu1 %v3704_v2 }
 0x29b   : > { %3252 = vmatmul.mubr.msk.bf16.vlgmr.msra.gmra.mxu1 %vm520_vm3, %v554_v48 }
 0x29c   : > { %3256 = vmatpush3.bf16.msra.mxu1 %v3564_v50  ;;  %3259 = vmatprep.mubr.msk.bf16.mxu1 %vm3705_vm0, %v3704_v2 }
 0x29d   : > { %3257 = vmatprep.subr.bf16.mxu1 %v3704_v2 }
 0x2a0   : > { %3258 = vmatpush3.bf16.msra.mxu1 %v3565_v51 }
 0x2a1   : > { %3263 = vmatprep.subr.bf16.mxu1 %v3704_v2 }
 0x2a3   : > { %3260 = vmatmul.mubr.msk.bf16.vlgmr.msra.gmra.mxu1 %vm520_vm3, %v554_v48 }
 0x2a4   : > { %3264 = vmatpush3.bf16.msra.mxu1 %v3566_v52  ;;  %3267 = vmatprep.mubr.msk.bf16.mxu1 %vm3705_vm0, %v3704_v2 }
 0x2a5   : > { %3265 = vmatprep.subr.bf16.mxu1 %v3704_v2 }
 0x2a8   : > { %3266 = vmatpush3.bf16.msra.mxu1 %v3567_v53 }
 0x2a9   : > { %3277 = vmatprep.subr.bf16.mxu1 %v3704_v2 }
 0x2ab   : > { %3268 = vmatmul.mubr.msk.bf16.vlgmr.msra.gmra.mxu1 %vm520_vm3, %v554_v48 }
 0x2ac   : > { %3279 = vmatprep.mubr.msk.bf16.mxu1 %vm3705_vm0, %v3704_v2 }
 0x353   : > { %v644_v58 = vpop.f32.mrf.mxu1 }
 0x354   : > { %v645_v59 = vadd.f32 %v644_v58, %v582_v56 }
 0x355   : > { %v3245_v61 = vpop.f32.mrf.mxu1 }
 0x356   : > { %v3944_v62 = vpack.c.bf16 %v645_v59, %v645_v59 }
 0x357   : > { %v647_v63 = vpop.f32.mrf.mxu1 }
 0x358   : > { %811 = vrot.lane.b32.xlu1 %v3944_v62, %s3708_s15 }
 0x359   : > { %v3246_v1 = vpop.f32.mrf.mxu1 }
 0x35b   : > { %v696_v4 = vpop.f32.mrf.mxu1 }
 0x35c   : > { %v697_v5 = vadd.f32 %v696_v4, %v586_v0 }
 0x35d   : > { %v3253_v7 = vpop.f32.mrf.mxu1 }
 0x35e   : > { %v3952_v8 = vpack.c.bf16 %v697_v5, %v697_v5 }
 0x35f   : > { %v699_v9 = vpop.f32.mrf.mxu1 }
 0x360   : > { %861 = vrot.lane.b32.xlu1 %v3952_v8, %s3708_s15 }
 0x361   : > { %v3254_v11 = vpop.f32.mrf.mxu1 }
 0x363   : > { %v748_v13 = vpop.f32.mrf.mxu1 }
 0x364   : > { %v749_v14 = vadd.f32 %v748_v13, %v590_v10 }
 0x365   : > { %v3261_v16 = vpop.f32.mrf.mxu1 }
 0x366   : > { %v3960_v17 = vpack.c.bf16 %v749_v14, %v749_v14 }
 0x367   : > { %v751_v19 = vpop.f32.mrf.mxu1 }
 0x368   : > { %910 = vrot.lane.b32.xlu1 %v3960_v17, %s3708_s15 }
 0x369   : > { %v3262_v21 = vpop.f32.mrf.mxu1 }
 0x36b   : > { %v800_v22 = vpop.f32.mrf.mxu1 }
 0x36c   : > { %v801_v23 = vadd.f32 %v800_v22, %v594_v20 }
 0x36d   : > { %v3269_v24 = vpop.f32.mrf.mxu1 }
 0x36e   : > { %v3965_v25 = vpack.c.bf16 %v801_v23, %v801_v23 }
 0x36f   : > { %v803_v26 = vpop.f32.mrf.mxu1 }
 0x370   : > { %959 = vrot.lane.b32.xlu1 %v3965_v25, %s3708_s15 }
 0x371   : > { %v3270_v27 = vpop.f32.mrf.mxu1 }
 0x3ca   : > { %v812_v28 = vpop.permute.xlu1 %811 }
 0x3cb   : > { %v818_v29 = vsel %vm813_vm4, %v812_v28, 0 }
 0x3cc   : > { %3272 = vmatpush3.bf16.xpose.msra.mxu0 %v818_v29 }
 0x3cd   : > { %3283 = vmatprep.subr.bf16.mxu0 %v3704_v2 }
 0x3d2   : > { %v862_v30 = vpop.permute.xlu1 %861 }
 0x3d3   : > { %v867_v31 = vsel %vm813_vm4, %v862_v30, 0  ;;  %3274 = vmatmul.mubr.msk.bf16.vlgmr.msra.gmra.mxu0 %vm813_vm4, %v3944_v62 }
 0x3d4   : > { %3278 = vmatpush3.bf16.xpose.msra.mxu1 %v867_v31  ;;  %3285 = vmatprep.mubr.msk.bf16.mxu0 %vm3705_vm0, %v3704_v2 }
 0x3d5   : > { %3289 = vmatprep.subr.bf16.mxu1 %v3704_v2 }
 0x3da   : > { %v911_v32 = vpop.permute.xlu1 %910 }
 0x3db   : > { %v916_v33 = vsel %vm813_vm4, %v911_v32, 0  ;;  %3280 = vmatmul.mubr.msk.bf16.vlgmr.msra.gmra.mxu1 %vm813_vm4, %v3952_v8 }
 0x3dc   : > { %3284 = vmatpush3.bf16.xpose.msra.mxu0 %v916_v33  ;;  %3291 = vmatprep.mubr.msk.bf16.mxu1 %vm3705_vm0, %v3704_v2 }
 0x3dd   : > { %3295 = vmatprep.subr.bf16.mxu0 %v3704_v2 }
 0x3e2   : > { %v960_v34 = vpop.permute.xlu1 %959 }
 0x3e3   : > { %v965_v35 = vsel %vm813_vm4, %v960_v34, 0  ;;  %3286 = vmatmul.mubr.msk.bf16.vlgmr.msra.gmra.mxu0 %vm813_vm4, %v3960_v17 }
 0x3e4   : > { %3290 = vmatpush3.bf16.xpose.msra.mxu1 %v965_v35  ;;  %3297 = vmatprep.mubr.msk.bf16.mxu0 %vm3705_vm0, %v3704_v2 }
 0x3e5   : > { %3301 = vmatprep.subr.bf16.mxu1 %v3704_v2 }
 0x3eb   : > { %3292 = vmatmul.mubr.msk.bf16.vlgmr.msra.gmra.mxu1 %vm813_vm4, %v3965_v25 }
 0x3ec   : > { %3303 = vmatprep.mubr.msk.bf16.mxu1 %vm3705_vm0, %v3704_v2 }
 0x493   : > { %v854_v38 = vpop.f32.mrf.mxu0 }
 0x494   : > { %v855_v39 = vadd.f32 %v3997_v37, %v854_v38 }
 0x495   : > { %v3275_v40 = vpop.f32.mrf.mxu0 }
 0x496   : > { %v1007_v41 = vsel %vm813_vm4, %v855_v39, -inf }
 0x497   : > { %1008 = vmax.xlane.f32.xlu0 %v1007_v41  ;;  %v857_v42 = vpop.f32.mrf.mxu0 }
 0x499   : > { %v3276_v43 = vpop.f32.mrf.mxu0 }
 0x49b   : > { %v903_v44 = vpop.f32.mrf.mxu1 }
 0x49c   : > { %v904_v45 = vadd.f32 %v3997_v37, %v903_v44 }
 0x49d   : > { %v3281_v47 = vpop.f32.mrf.mxu1 }
 0x49e   : > { %v1010_v48 = vsel %vm813_vm4, %v904_v45, -inf }
 0x49f   : > { %1011 = vmax.xlane.f32.xlu1 %v1010_v48  ;;  %v906_v49 = vpop.f32.mrf.mxu1  ;;  %v1252_v48 = vld [vmem:[%s4438_s6] sm:$0xf] }
 0x4a0   : > { %v1260_v49 = vsel %vm1060_vm5, %v1252_v48, 0 }
 0x4a1   : > { %v3282_v50 = vpop.f32.mrf.mxu1 }
 0x4a2   : > { %v1253_v50 = vld [vmem:[%s4438_s6 + $0x4] sm:$0xf] }
 0x4a3   : > { %v952_v51 = vpop.f32.mrf.mxu0 }
 0x4a4   : > { %v953_v52 = vadd.f32 %v3997_v37, %v952_v51  ;;  %v1306_v51 = vsel %vm1060_vm5, %v1253_v50, 0 }
 0x4a5   : > { %v3287_v53 = vpop.f32.mrf.mxu0 }
 0x4a6   : > { %v1013_v54 = vsel %vm813_vm4, %v953_v52, -inf }
 0x4a7   : > { %1014 = vmax.xlane.f32.xlu0 %v1013_v54  ;;  %v955_v55 = vpop.f32.mrf.mxu0 }
 0x4a9   : > { %v3288_v56 = vpop.f32.mrf.mxu0 }
 0x4ab   : > { %v1001_v57 = vpop.f32.mrf.mxu1 }
 0x4ac   : > { %v1002_v58 = vadd.f32 %v3997_v37, %v1001_v57 }
 0x4ad   : > { %v3293_v59 = vpop.f32.mrf.mxu1 }
 0x4ae   : > { %v1016_v60 = vsel %vm813_vm4, %v1002_v58, -inf  ;;  %v1255_v59 = vld [vmem:[%s4438_s6 + $0xc] sm:$0xf] }
 0x4af   : > { %v1004_v61 = vpop.f32.mrf.mxu1  ;;  %1017 = vmax.xlane.f32.xlu0 %v1016_v60 }
 0x4b0   : > { %1104 = vrot.lane.b32.xlu1 %v3952_v8, %s3709_s12 }
 0x4b1   : > { %v3294_v63 = vpop.f32.mrf.mxu1 }
 0x4b2   : > { %v1398_v63 = vsel %vm1060_vm5, %v1255_v59, 0  ;;  %v3571_v59 = vld [vmem:[%s4440_s8 + $0x10] sm:$0xff]  }
 0x4c5   : > { %1055 = vrot.lane.b32.xlu0 %v3944_v62, %s3709_s12 }
 0x4c9   : > { %1152 = vrot.lane.b32.xlu0 %v3960_v17, %s3709_s12 }
 0x520   : > { %v1009_v0 = vpop.xlane.xlu0 %1008 }
 0x521   : > { %v1019_v1 = vsub.f32 %v855_v39, %v1009_v0 }
 0x523   : > { %v1023_v3 = vmul.f32 1.442695, %v1019_v1 }
 0x525   : > { %3594 = vpow2.f32 %v1023_v3 }
 0x528   : > { %v1012_v4 = vpop.xlane.xlu1 %1011 }
 0x529   : > { %v1020_v5 = vsub.f32 %v904_v45, %v1012_v4 }
 0x52b   : > { %v1025_v6 = vmul.f32 1.442695, %v1020_v5 }
 0x52c   : > { %v1105_v7 = vpop.permute.xlu1 %1104 }
 0x52d   : > { %3596 = vpow2.f32 %v1025_v6  ;;  %v1110_v9 = vsel %vm1060_vm5, %v1105_v7, 0 }
 0x52e   : > { %3302 = vmatpush3.bf16.msra.mxu1 %v1110_v9 }
 0x52f   : > { %3313 = vmatprep.subr.bf16.mxu1 %v3704_v2 }
 0x530   : > { %v1015_v8 = vpop.xlane.xlu0 %1014 }
 0x531   : > { %v1021_v62 = vsub.f32 %v953_v52, %v1015_v8  ;;  %v1254_v52 = vld [vmem:[%s4438_s6 + $0x8] sm:$0xf] }
 0x532   : > { %v3595_v10 = vpop.eup %3594  ;;  %v1352_v55 = vsel %vm1060_vm5, %v1254_v52, 0 }
 0x533   : > { %v1027_v11 = vmul.f32 1.442695, %v1021_v62  ;;  %v1031_v12 = vsel %vm813_vm4, %v3595_v10, 0.0 }
 0x534   : > { %1032 = vadd.xlane.f32.xlu0 %v1031_v12 }
 0x535   : > { %3598 = vpow2.f32 %v1027_v11 }
 0x538   : > { %v1018_v13 = vpop.xlane.xlu0 %1017 }
 0x539   : > { %v1022_v14 = vsub.f32 %v1002_v58, %v1018_v13 }
 0x53a   : > { %v3597_v15 = vpop.eup %3596 }
 0x53b   : > { %v1029_v16 = vmul.f32 1.442695, %v1022_v14  ;;  %v1034_v17 = vsel %vm813_vm4, %v3597_v15, 0.0 }
 0x53c   : > { %1035 = vadd.xlane.f32.xlu0 %v1034_v17  ;;  %v1056_v19 = vpop.permute.xlu0 %1055 }
 0x53d   : > { %3600 = vpow2.f32 %v1029_v16  ;;  %v1062_v20 = vsel %vm1060_vm5, %v1056_v19, 0 }
 0x53e   : > { %3296 = vmatpush3.bf16.msra.mxu0 %v1062_v20 }
 0x53f   : > { %3307 = vmatprep.subr.bf16.mxu0 %v3704_v2 }
 0x540   : > { %v1153_v26 = vpop.permute.xlu0 %1152 }
 0x541   : > { %v1158_v33 = vsel %vm1060_vm5, %v1153_v26, 0 }
 0x542   : > { %v3599_v21 = vpop.eup %3598 }
 0x543   : > { %v1037_v22 = vsel %vm813_vm4, %v3599_v21, 0.0 }
 0x544   : > { %1038 = vadd.xlane.f32.xlu0 %v1037_v22 }
 0x54a   : > { %v3601_v23 = vpop.eup %3600 }
 0x54b   : > { %v1040_v24 = vsel %vm813_vm4, %v3601_v23, 0.0 }
 0x54c   : > { %1041 = vadd.xlane.f32.xlu0 %v1040_v24  ;;  %v4074_v24 = vld [vmem:[%s4441_s9] sm:$0x3] }
 0x562   : > { %1200 = vrot.lane.b32.xlu0 %v3965_v25, %s3709_s12 }
 0x5bd   : > { %v1033_v27 = vpop.xlane.xlu0 %1032 }
 0x5be   : > { %3602 = vrcp.f32 %v1033_v27 }
 0x5c5   : > { %v1036_v28 = vpop.xlane.xlu0 %1035 }
 0x5c6   : > { %3604 = vrcp.f32 %v1036_v28  ;;  %v1444_v28 = vunpack.c.l.bf16 %v4074_v24 }
 0x5cb   : > { %v3603_v29 = vpop.eup %3602 }
 0x5cc   : > { %v1047_v30 = vmul.f32 %v3603_v29, %v3595_v10 }
 0x5cd   : > { %v1039_v31 = vpop.xlane.xlu0 %1038 }
 0x5ce   : > { %3606 = vrcp.f32 %v1039_v31  ;;  %v1051_v32 = vpack.c.bf16 %v1047_v30, %v1047_v30 }
 0x5d0   : > { %3298 = vmatmul.mubr.msk.bf16.vlgmr.msra.gmra.mxu0 %vm813_vm4, %v1051_v32 }
 0x5d1   : > { %3308 = vmatpush3.bf16.msra.mxu0 %v1158_v33  ;;  %3309 = vmatprep.mubr.msk.bf16.mxu0 %vm3705_vm0, %v3704_v2  ;;  %v4078_v33 = vrot.slane %v1444_v28, %v3875_v18 }
 0x5d2   : > { %3319 = vmatprep.subr.bf16.mxu0 %v3704_v2 }
 0x5d3   : > { %v3605_v25 = vpop.eup %3604 }
 0x5d4   : > { %v1048_v34 = vmul.f32 %v3605_v25, %v3597_v15 }
 0x5d5   : > { %v1042_v35 = vpop.xlane.xlu0 %1041 }
 0x5d6   : > { %3608 = vrcp.f32 %v1042_v35  ;;  %v1052_v38 = vpack.c.bf16 %v1048_v34, %v1048_v34 }
 0x5d8   : > { %3304 = vmatmul.mubr.msk.bf16.vlgmr.msra.gmra.mxu1 %vm813_vm4, %v1052_v38 }
 0x5d9   : > { %v1201_v39 = vpop.permute.xlu0 %1200  ;;  %3315 = vmatprep.mubr.msk.bf16.mxu1 %vm3705_vm0, %v3704_v2 }
 0x5da   : > { %v1206_v40 = vsel %vm1060_vm5, %v1201_v39, 0 }
 0x5db   : > { %v3607_v41 = vpop.eup %3606  ;;  %3314 = vmatpush3.bf16.msra.mxu1 %v1206_v40 }
 0x5dc   : > { %v1049_v42 = vmul.f32 %v3607_v41, %v3599_v21  ;;  %3325 = vmatprep.subr.bf16.mxu1 %v3704_v2 }
 0x5de   : > { %v1053_v43 = vpack.c.bf16 %v1049_v42, %v1049_v42 }
 0x5e0   : > { %3310 = vmatmul.mubr.msk.bf16.vlgmr.msra.gmra.mxu0 %vm813_vm4, %v1053_v43 }
 0x5e1   : > { %3321 = vmatprep.mubr.msk.bf16.mxu0 %vm3705_vm0, %v3704_v2  ;;  %3320 = vmatpush3.bf16.msra.mxu0 %v1260_v49 }
 0x5e2   : > { %3331 = vmatprep.subr.bf16.mxu0 %v3704_v2 }
 0x5e3   : > { %v3609_v44 = vpop.eup %3608 }
 0x5e4   : > { %v1050_v45 = vmul.f32 %v3609_v44, %v3601_v23 }
 0x5e6   : > { %v1054_v47 = vpack.c.bf16 %v1050_v45, %v1050_v45  ;;  %v3568_v45 = vld [vmem:[%s4439_s7 + $0x8] sm:$0xff]  }
 0x5e8   : > { %3316 = vmatmul.mubr.msk.bf16.vlgmr.msra.gmra.mxu1 %vm813_vm4, %v1054_v47  ;;  %v3569_v47 = vld [vmem:[%s4439_s7] sm:$0xff]  }
 0x5e9   : > { %3327 = vmatprep.mubr.msk.bf16.mxu1 %vm3705_vm0, %v3704_v2  ;;  %3326 = vmatpush3.bf16.msra.mxu1 %v1306_v51 }
 0x5ea   : > { %3337 = vmatprep.subr.bf16.mxu1 %v3704_v2 }
 0x690   : > { %v1098_v53 = vpop.f32.mrf.mxu0 }
 0x691   : > { %v1248_v54 = vpack.c.bf16 %v1098_v53, %v1098_v53 }
 0x692   : > { %v3299_v56 = vpop.f32.mrf.mxu0 }
 0x693   : > { %3322 = vmatmul.mubr.msk.bf16.vlgmr.msra.gmra.mxu0 %vm813_vm4, %v1248_v54 }
 0x694   : > { %v1101_v57 = vpop.f32.mrf.mxu0  ;;  %3332 = vmatpush3.bf16.msra.mxu0 %v1352_v55  ;;  %3333 = vmatprep.mubr.msk.bf16.mxu0 %vm3705_vm0, %v3704_v2 }
 0x695   : > { %3343 = vmatprep.subr.bf16.mxu0 %v3704_v2 }
 0x696   : > { %v3300_v58 = vpop.f32.mrf.mxu0 }
 0x697   : > { %v3570_v58 = vld [vmem:[%s4440_s8 + $0x18] sm:$0xff]  }
 0x698   : > { %v1146_v60 = vpop.f32.mrf.mxu1 }
 0x699   : > { %v1249_v61 = vpack.c.bf16 %v1146_v60, %v1146_v60  ;;  %v3572_v60 = vld [vmem:[%s4440_s8 + $0x8] sm:$0xff]  }
 0x69a   : > { %v3305_v0 = vpop.f32.mrf.mxu1 }
 0x69b   : > { %3328 = vmatmul.mubr.msk.bf16.vlgmr.msra.gmra.mxu1 %vm813_vm4, %v1249_v61  ;;  %v3573_v61 = vld [vmem:[%s4440_s8] sm:$0xff]  }
 0x69c   : > { %v1149_v1 = vpop.f32.mrf.mxu1  ;;  %3338 = vmatpush3.bf16.msra.mxu1 %v1398_v63  ;;  %3339 = vmatprep.mubr.msk.bf16.mxu1 %vm3705_vm0, %v3704_v2  ;;  %v1478_v63 = vrot.slane %v4074_v24, 1 }
 0x69d   : > { %3351 = vmatprep.subr.bf16.mxu1 %v3704_v2 }
 0x69e   : > { %v3306_v3 = vpop.f32.mrf.mxu1  ;;  %v1480_v0 = vunpack.c.l.bf16 %v1478_v63  ;;  %v3056_v63 = vld [vmem:[%s4437_s5 + $0x5] sm:$0x1] }
 0x6a0   : > { %v1194_v4 = vpop.f32.mrf.mxu0  ;;  %v1484_v1 = vrot.slane %v1480_v0, %v3875_v18 }
 0x6a1   : > { %v1250_v5 = vpack.c.bf16 %v1194_v4, %v1194_v4 }
 0x6a2   : > { %v3311_v6 = vpop.f32.mrf.mxu0 }
 0x6a3   : > { %3334 = vmatmul.mubr.msk.bf16.vlgmr.msra.gmra.mxu0 %vm813_vm4, %v1250_v5 }
 0x6a4   : > { %v1197_v7 = vpop.f32.mrf.mxu0  ;;  %3347 = vmatprep.mubr.msk.bf16.mxu0 %vm3705_vm0, %v3704_v2  ;;  %3344 = vmatpush3.bf16.msra.mxu0 %v3568_v45 }
 0x6a5   : > { %3345 = vmatprep.subr.bf16.mxu0 %v3704_v2 }
 0x6a6   : > { %v3312_v9 = vpop.f32.mrf.mxu0 }
 0x6a8   : > { %v1242_v8 = vpop.f32.mrf.mxu1  ;;  %3346 = vmatpush3.bf16.msra.mxu0 %v3569_v47 }
 0x6a9   : > { %v1251_v62 = vpack.c.bf16 %v1242_v8, %v1242_v8  ;;  %3363 = vmatprep.subr.bf16.mxu0 %v3704_v2 }
 0x6aa   : > { %v3317_v10 = vpop.f32.mrf.mxu1 }
 0x6ab   : > { %3340 = vmatmul.mubr.msk.bf16.vlgmr.msra.gmra.mxu1 %vm813_vm4, %v1251_v62 }
 0x6ac   : > { %v1245_v11 = vpop.f32.mrf.mxu1  ;;  %3359 = vmatprep.mubr.msk.bf16.mxu1 %vm3705_vm0, %v3704_v2  ;;  %3352 = vmatpush3.bf16.msra.mxu1 %v3570_v58  ;;  %v3057_v58 = vld [vmem:[%s4437_s5 + $0x6] sm:$0x1] }
 0x6ad   : > { %3353 = vmatprep.subr.bf16.mxu1 %v3704_v2 }
 0x6ae   : > { %v3318_v12 = vpop.f32.mrf.mxu1 }
 0x6b0   : > { %3354 = vmatpush3.bf16.msra.mxu1 %v3571_v59 }
 0x6b1   : > { %3355 = vmatprep.subr.bf16.mxu1 %v3704_v2 }
 0x6b4   : > { %3356 = vmatpush3.bf16.msra.mxu1 %v3572_v60  ;;  %v1691_v60 = vunpack.c.l.bf16 %v3057_v58 }
 0x6b5   : > { %3357 = vmatprep.subr.bf16.mxu1 %v3704_v2 }
 0x6b6   : > { %v1704_v0 = vrot.slane %v1691_v60, %v3875_v18 }
 0x6b8   : > { %3358 = vmatpush3.bf16.msra.mxu1 %v3573_v61 }
 0x6b9   : > { %3379 = vmatprep.subr.bf16.mxu1 %v3704_v2 }
 0x753   : > { %v1296_v13 = vpop.f32.mrf.mxu0 }
 0x755   : > { %v3323_v14 = vpop.f32.mrf.mxu0 }
 0x757   : > { %v1299_v15 = vpop.f32.mrf.mxu0 }
 0x759   : > { %v3324_v16 = vpop.f32.mrf.mxu0 }
 0x75b   : > { %v1342_v17 = vpop.f32.mrf.mxu1 }
 0x75c   : > { %v1440_v27 = vadd.f32 %v1342_v17, %v1296_v13 }
 0x75d   : > { %v3329_v19 = vpop.f32.mrf.mxu1 }
 0x75f   : > { %v1345_v20 = vpop.f32.mrf.mxu1 }
 0x761   : > { %v3330_v21 = vpop.f32.mrf.mxu1 }
 0x763   : > { %v1388_v22 = vpop.f32.mrf.mxu0 }
 0x764   : > { %v1441_v30 = vadd.f32 %v1440_v27, %v1388_v22 }
 0x765   : > { %v3335_v23 = vpop.f32.mrf.mxu0 }
 0x767   : > { %v1391_v26 = vpop.f32.mrf.mxu0 }
 0x769   : > { %v3336_v29 = vpop.f32.mrf.mxu0 }
 0x76b   : > { %v1434_v31 = vpop.f32.mrf.mxu1 }
 0x76c   : > { %v1442_v32 = vadd.f32 %v1441_v30, %v1434_v31 }
 0x76d   : > { %v3341_v25 = vpop.f32.mrf.mxu1 }
 0x76e   : > { %v1443_v34 = vadd.f32 %v1442_v32, %v3897_v46 }
 0x76f   : > { %v1437_v35 = vpop.f32.mrf.mxu1 }
 0x770   : > { %v1449_v38 = vadd.f32 %v4078_v33, %v1443_v34 }
 0x771   : > { %v3342_v39 = vpop.f32.mrf.mxu1 }
 0x772   : > { %v1450_v40 = vsel %vm520_vm3, %v1449_v38, 0.0  ;;  %v3575_v39 = vld [vmem:[%s4436_s4 + $0x68] sm:$0xff]  }
 0x773   : > { %1451 = vadd.xlane.f32.xlu1 %v1450_v40  ;;  %v3577_v40 = vld [vmem:[%s4436_s4 + $0x60] sm:$0xff]  }
 0x784   : > { %1468 = vrot.lane.b32.xlu1 %v4078_v33, %s4444_s25 }
 0x788   : > { %1627 = vrot.lane.b32.xlu1 %v4074_v24, %s4444_s25  ;;  %s3711_s25 = smov 32  }
 0x7fc   : > { %v1452_v41 = vpop.xlane.xlu1 %1451 }
 0x7fd   : > { %v1453_v42 = vmul.f32 0.03125, %v1452_v41 }
 0x7ff   : > { %v1454_v43 = vsub.f32 %v1449_v38, %v1453_v42  ;;  %v3574_v38 = vld [vmem:[%s4436_s4 + $0x48] sm:$0xff]  }
 0x800   : > { %v1469_v54 = vpop.permute.xlu1 %1468 }
 0x801   : > { %v1455_v44 = vmul.f32 %v1454_v43, %v1454_v43 }
 0x803   : > { %v1456_v46 = vsel %vm520_vm3, %v1455_v44, 0.0 }
 0x804   : > { %1457 = vadd.xlane.f32.xlu0 %v1456_v46  ;;  %v1628_v17 = vpop.permute.xlu1 %1627 }
 0x805   : > { %v1629_v19 = vrot.slane %v1628_v17, 1 }
 0x807   : > { %v1631_v20 = vunpack.c.l.bf16 %v1629_v19 }
 0x809   : > { %v1635_v21 = vrot.slane %v1631_v20, %v3875_v18 }
 0x81a   : > { %1464 = vrot.lane.b32.xlu0 %v4078_v33, %s4446_s30  ;;  %s3645_s30 = sshll.u32 %s3712_s21, 4  ;;  %s3646_s30 = int_to_ptr.vmem [resolvable:$false] %s3645_s30 }
 0x88d   : > { %v1458_v48 = vpop.xlane.xlu0 %1457 }
 0x88e   : > { %v1459_v49 = vmul.f32 0.03125, %v1458_v48 }
 0x890   : > { %v1460_v50 = vadd.f32 1e-12, %v1459_v49 }
 0x891   : > { %v1465_v52 = vpop.permute.xlu0 %1464 }
 0x892   : > { %3610 = vrsqrt.f32 %v1460_v50 }
 0x89f   : > { %v3611_v51 = vpop.eup %3610 }
 0x8a0   : > { %v1462_v53 = vmul.f32 %v3611_v51, %v1454_v43 }
 0x8a2   : > { %v1467_v55 = vmul.f32 %v1465_v52, %v1462_v53  ;;  %v3578_v52 = vld [vmem:[%s4436_s4 + $0x58] sm:$0xff]  }
 0x8a4   : > { %v1471_v56 = vadd.f32 %v1469_v54, %v1467_v55  ;;  %v3579_v54 = vld [vmem:[%s4436_s4 + $0x50] sm:$0xff]   ;;  %v3580_v55 = vld [vmem:[%s4436_s4 + $0x78] sm:$0xff]  }
 0x8a6   : > { %v1476_v57 = vpack.c.bf16 %v1471_v56, %v1471_v56 }
 0x8a8   : > { %3348 = vmatmul.mubr.msk.bf16.vlgmr.msra.gmra.mxu0 %vm520_vm3, %v1476_v57  ;;  %v3055_v57 = vld [vmem:[%s4437_s5 + $0x4] sm:$0x1] }
 0x8a9   : > { %3367 = vmatprep.mubr.msk.bf16.mxu0 %vm3705_vm0, %v3704_v2  ;;  %3364 = vmatpush3.bf16.msra.mxu0 %v3574_v38  ;;  %v1689_v59 = vunpack.c.l.bf16 %v3055_v57 }
 0x8aa   : > { %3365 = vmatprep.subr.bf16.mxu0 %v3704_v2 }
 0x8ab   : > { %v1696_v61 = vrot.slane %v1689_v59, %v3875_v18 }
 0x968   : > { %v1534_v3 = vpop.f32.mrf.mxu0 }
 0x969   : > { %v1535_v4 = vadd.f32 %v1534_v3, %v1484_v1 }
 0x96a   : > { %v3349_v5 = vpop.f32.mrf.mxu0 }
 0x96b   : > { %v1540_v6 = vmul.f32 %v1535_v4, %v1535_v4  ;;  %v1690_v5 = vunpack.c.l.bf16 %v3056_v63 }
 0x96c   : > { %v1537_v7 = vpop.f32.mrf.mxu0 }
 0x96d   : > { %v1541_v9 = vmul.f32 %v1540_v6, %v1535_v4 }
 0x96e   : > { %v3350_v8 = vpop.f32.mrf.mxu0 }
 0x96f   : > { %v1542_v62 = vmul.f32 0.044715, %v1541_v9 }
 0x971   : > { %v1543_v10 = vadd.f32 %v1542_v62, %v1535_v4 }
 0x973   : > { %v1544_v11 = vmul.f32 0.7978846, %v1543_v10 }
 0x975   : > { %3612 = vtanh.f32 %v1544_v11  ;;  %v1700_v11 = vrot.slane %v1690_v5, %v3875_v18 }
 0x982   : > { %v3613_v12 = vpop.eup %3612 }
 0x983   : > { %v1546_v13 = vadd.f32 1.0, %v3613_v12 }
 0x985   : > { %v1547_v14 = vmul.f32 0.5, %v1546_v13 }
 0x987   : > { %v1548_v15 = vmul.f32 %v1547_v14, %v1535_v4  ;;  %v3058_v14 = vld [vmem:[%s4437_s5 + $0x7] sm:$0x1] }
 0x988   : > { %v1692_v19 = vunpack.c.l.bf16 %v3058_v14 }
 0x989   : > { %v1557_v16 = vpack.c.bf16 %v1548_v15, %v1548_v15 }
 0x98b   : > { %3360 = vmatmul.mubr.msk.bf16.vlgmr.msra.gmra.mxu1 %vm1582_vm6, %v1557_v16 }
 0x98c   : > { %3383 = vmatprep.mubr.msk.bf16.mxu1 %vm3705_vm0, %v3704_v2  ;;  %3380 = vmatpush3.bf16.msra.mxu1 %v3575_v39 }
 0x98d   : > { %3381 = vmatprep.subr.bf16.mxu1 %v3704_v2 }
 0x990   : > { %3382 = vmatpush3.bf16.msra.mxu1 %v3577_v40 }
 0x991   : > { %3395 = vmatprep.subr.bf16.mxu1 %v3704_v2 }
 0xa4b   : > { %v1620_v22 = vpop.f32.mrf.mxu1 }
 0xa4c   : > { %v1626_v23 = vadd.f32 %v1620_v22, %v1471_v56  ;;  %v3581_v56 = vld [vmem:[%s4436_s4 + $0x70] sm:$0xff]  }
 0xa4d   : > { %v3361_v26 = vpop.f32.mrf.mxu1 }
 0xa4e   : > { %v1636_v27 = vadd.f32 %v1635_v21, %v1626_v23  ;;  %v1708_v23 = vrot.slane %v1692_v19, %v3875_v18 }
 0xa4f   : > { %v1623_v28 = vpop.f32.mrf.mxu1 }
 0xa50   : > { %v1637_v29 = vsel %vm520_vm3, %v1636_v27, 0.0 }
 0xa51   : > { %1638 = vadd.xlane.f32.xlu0 %v1637_v29  ;;  %v3362_v30 = vpop.f32.mrf.mxu1 }
 0xa67   : > { %1654 = vrot.lane.b32.xlu0 %v4074_v24, %s3711_s25  ;;  %v3576_v24 = vld [vmem:[%s4436_s4 + $0x40] sm:$0xff]  }
 0xa68   : > { %3366 = vmatpush3.bf16.msra.mxu0 %v3576_v24 }
 0xa69   : > { %3371 = vmatprep.subr.bf16.mxu0 %v3704_v2 }
 0xada   : > { %v1639_v31 = vpop.xlane.xlu0 %1638 }
 0xadb   : > { %v1640_v32 = vmul.f32 0.03125, %v1639_v31 }
 0xadd   : > { %v1641_v25 = vsub.f32 %v1636_v27, %v1640_v32 }
 0xade   : > { %v1655_v43 = vpop.permute.xlu0 %1654 }
 0xadf   : > { %v1642_v34 = vmul.f32 %v1641_v25, %v1641_v25  ;;  %v1656_v44 = vrot.slane %v1655_v43, 1 }
 0xae1   : > { %v1643_v35 = vsel %vm520_vm3, %v1642_v34, 0.0  ;;  %v1658_v46 = vunpack.c.l.bf16 %v1656_v44 }
 0xae2   : > { %1644 = vadd.xlane.f32.xlu1 %v1643_v35 }
 0xae3   : > { %v1662_v48 = vrot.slane %v1658_v46, %v3875_v18 }
 0xaf3   : > { %1650 = vrot.lane.b32.xlu1 %v4078_v33, %s3711_s25 }
 0xb6b   : > { %v1645_v41 = vpop.xlane.xlu1 %1644 }
 0xb6c   : > { %v1646_v33 = vmul.f32 0.03125, %v1645_v41 }
 0xb6e   : > { %v1647_v42 = vadd.f32 1e-12, %v1646_v33 }
 0xb6f   : > { %v1651_v47 = vpop.permute.xlu1 %1650 }
 0xb70   : > { %3614 = vrsqrt.f32 %v1647_v42 }
 0xb7d   : > { %v3615_v45 = vpop.eup %3614 }
 0xb7e   : > { %v1649_v49 = vmul.f32 %v3615_v45, %v1641_v25 }
 0xb80   : > { %v1653_v50 = vmul.f32 %v1651_v47, %v1649_v49 }
 0xb82   : > { %v4146_v51 = vadd.f32 %v1662_v48, %v1653_v50 }
 0xb84   : > { %v1666_v53 = vpack.c.bf16 %v4146_v51, %v4146_v51 }
 0xb86   : > { %3368 = vmatmul.mubr.msk.bf16.vlgmr.msra.gmra.mxu0 %vm520_vm3, %v1666_v53  ;;  %3384 = vmatmul.mubr.msk.bf16.vlgmr.msra.gmra.mxu1 %vm520_vm3, %v1666_v53 }
 0xb87   : > { %3372 = vmatpush3.bf16.msra.mxu0 %v3578_v52  ;;  %3375 = vmatprep.mubr.msk.bf16.mxu0 %vm3705_vm0, %v3704_v2 }
 0xb88   : > { %3373 = vmatprep.subr.bf16.mxu0 %v3704_v2  ;;  %3397 = vmatprep.mubr.msk.bf16.mxu1 %vm3705_vm0, %v3704_v2 }
 0xb8b   : > { %3374 = vmatpush3.bf16.msra.mxu0 %v3579_v54 }
 0xb8c   : > { %3387 = vmatprep.subr.bf16.mxu0 %v3704_v2 }
 0xb8e   : > { %3376 = vmatmul.mubr.msk.bf16.vlgmr.msra.gmra.mxu0 %vm520_vm3, %v1666_v53 }
 0xb8f   : > { %3388 = vmatpush3.bf16.msra.mxu0 %v3580_v55  ;;  %3391 = vmatprep.mubr.msk.bf16.mxu0 %vm3705_vm0, %v3704_v2 }
 0xb90   : > { %3389 = vmatprep.subr.bf16.mxu0 %v3704_v2 }
 0xb93   : > { %3390 = vmatpush3.bf16.msra.mxu0 %v3581_v56 }
 0xb94   : > { %3401 = vmatprep.subr.bf16.mxu0 %v3704_v2 }
 0xb96   : > { %3392 = vmatmul.mubr.msk.bf16.vlgmr.msra.gmra.mxu0 %vm520_vm3, %v1666_v53 }
 0xb97   : > { %3403 = vmatprep.mubr.msk.bf16.mxu0 %vm3705_vm0, %v3704_v2 }
 0xc46   : > { %v1758_v1 = vpop.f32.mrf.mxu0  ;;  %v1862_v3 = vpop.f32.mrf.mxu1 }
 0xc47   : > { %v1759_v4 = vadd.f32 %v1758_v1, %v1696_v61  ;;  %v1863_v8 = vadd.f32 %v1862_v3, %v1704_v0 }
 0xc48   : > { %v3369_v6 = vpop.f32.mrf.mxu0  ;;  %v3385_v7 = vpop.f32.mrf.mxu1 }
 0xc49   : > { %v4189_v9 = vpack.c.bf16 %v1759_v4, %v1759_v4  ;;  %v4197_v15 = vpack.c.bf16 %v1863_v8, %v1863_v8 }
 0xc4a   : > { %v1761_v62 = vpop.f32.mrf.mxu0  ;;  %v1865_v10 = vpop.f32.mrf.mxu1 }
 0xc4b   : > { %1925 = vrot.lane.b32.xlu0 %v4189_v9, %s3708_s15 }
 0xc4c   : > { %v3370_v12 = vpop.f32.mrf.mxu0  ;;  %v3386_v13 = vpop.f32.mrf.mxu1 }
 0xc4e   : > { %v1810_v16 = vpop.f32.mrf.mxu0 }
 0xc4f   : > { %v1811_v17 = vadd.f32 %v1810_v16, %v1700_v11  ;;  %2023 = vrot.lane.b32.xlu0 %v4197_v15, %s3708_s15 }
 0xc50   : > { %v3377_v20 = vpop.f32.mrf.mxu0 }
 0xc51   : > { %v4201_v21 = vpack.c.bf16 %v1811_v17, %v1811_v17 }
 0xc52   : > { %v1813_v22 = vpop.f32.mrf.mxu0 }
 0xc53   : > { %1974 = vrot.lane.b32.xlu1 %v4201_v21, %s3708_s15 }
 0xc54   : > { %v3378_v26 = vpop.f32.mrf.mxu0 }
 0xc56   : > { %v1914_v27 = vpop.f32.mrf.mxu0 }
 0xc57   : > { %v1915_v28 = vadd.f32 %v1914_v27, %v1708_v23 }
 0xc58   : > { %v3393_v29 = vpop.f32.mrf.mxu0 }
 0xc59   : > { %v4206_v30 = vpack.c.bf16 %v1915_v28, %v1915_v28 }
 0xc5a   : > { %v1917_v31 = vpop.f32.mrf.mxu0 }
 0xc5b   : > { %2072 = vrot.lane.b32.xlu1 %v4206_v30, %s3708_s15  ;;  %s387_s15 = scalar_lea.vmem [#allocation2], %s386_s22 }
 0xc5c   : > { %v3394_v32 = vpop.f32.mrf.mxu0 }
 0xcbd   : > { %v1926_v25 = vpop.permute.xlu0 %1925 }
 0xcbe   : > { %v1931_v34 = vsel %vm813_vm4, %v1926_v25, 0 }
 0xcbf   : > { %3396 = vmatpush3.bf16.xpose.msra.mxu1 %v1931_v34 }
 0xcc0   : > { %3407 = vmatprep.subr.bf16.mxu1 %v3704_v2 }
 0xcc1   : > { %v2024_v35 = vpop.permute.xlu0 %2023 }
 0xcc2   : > { %v2029_v39 = vsel %vm813_vm4, %v2024_v35, 0 }
 0xcc5   : > { %v1975_v38 = vpop.permute.xlu1 %1974 }
 0xcc6   : > { %v1980_v24 = vsel %vm813_vm4, %v1975_v38, 0  ;;  %3398 = vmatmul.mubr.msk.bf16.vlgmr.msra.gmra.mxu1 %vm813_vm4, %v4189_v9 }
 0xcc7   : > { %3402 = vmatpush3.bf16.xpose.msra.mxu0 %v1980_v24  ;;  %3408 = vmatpush3.bf16.xpose.msra.mxu1 %v2029_v39 }
 0xcc8   : > { %3409 = vmatprep.mubr.msk.bf16.mxu1 %vm3705_vm0, %v3704_v2  ;;  %3413 = vmatprep.subr.bf16.mxu0 %v3704_v2 }
 0xcc9   : > { %3419 = vmatprep.subr.bf16.mxu1 %v3704_v2 }
 0xccd   : > { %v2073_v40 = vpop.permute.xlu1 %2072 }
 0xcce   : > { %v2078_v41 = vsel %vm813_vm4, %v2073_v40, 0  ;;  %3404 = vmatmul.mubr.msk.bf16.vlgmr.msra.gmra.mxu0 %vm813_vm4, %v4201_v21  ;;  %3410 = vmatmul.mubr.msk.bf16.vlgmr.msra.gmra.mxu1 %vm813_vm4, %v4197_v15 }
 0xccf   : > { %3414 = vmatpush3.bf16.xpose.msra.mxu0 %v2078_v41  ;;  %3415 = vmatprep.mubr.msk.bf16.mxu0 %vm3705_vm0, %v3704_v2 }
 0xcd0   : > { %3421 = vmatprep.mubr.msk.bf16.mxu1 %vm3705_vm0, %v3704_v2  ;;  %3425 = vmatprep.subr.bf16.mxu0 %v3704_v2 }
 0xcd6   : > { %3416 = vmatmul.mubr.msk.bf16.vlgmr.msra.gmra.mxu0 %vm813_vm4, %v4206_v30 }
 0xcd7   : > { %3427 = vmatprep.mubr.msk.bf16.mxu0 %vm3705_vm0, %v3704_v2 }
 0xd86   : > { %v1967_v33 = vpop.f32.mrf.mxu1 }
 0xd87   : > { %v1968_v42 = vadd.f32 %v3997_v37, %v1967_v33 }
 0xd88   : > { %v3399_v43 = vpop.f32.mrf.mxu1 }
 0xd89   : > { %v2120_v44 = vsel %vm813_vm4, %v1968_v42, -inf }
 0xd8a   : > { %2121 = vmax.xlane.f32.xlu0 %v2120_v44  ;;  %v1970_v46 = vpop.f32.mrf.mxu1 }
 0xd8c   : > { %v3400_v45 = vpop.f32.mrf.mxu1 }
 0xd8e   : > { %v2016_v47 = vpop.f32.mrf.mxu0  ;;  %v2065_v48 = vpop.f32.mrf.mxu1 }
 0xd8f   : > { %v2017_v49 = vadd.f32 %v3997_v37, %v2016_v47  ;;  %v2066_v50 = vadd.f32 %v3997_v37, %v2065_v48 }
 0xd90   : > { %v3405_v52 = vpop.f32.mrf.mxu0  ;;  %v3411_v53 = vpop.f32.mrf.mxu1 }
 0xd91   : > { %v2126_v54 = vsel %vm813_vm4, %v2066_v50, -inf  ;;  %v2123_v55 = vsel %vm813_vm4, %v2017_v49, -inf  ;;  %v3080_v52 = vld [vmem:[%s4438_s6 + $0x14] sm:$0xf] }
 0xd92   : > { %2127 = vmax.xlane.f32.xlu0 %v2126_v54  ;;  %v2068_v56 = vpop.f32.mrf.mxu1  ;;  %2124 = vmax.xlane.f32.xlu1 %v2123_v55  ;;  %v2019_v57 = vpop.f32.mrf.mxu0  ;;  %v2419_v53 = vsel %vm1060_vm5, %v3080_v52, 0  ;;  %v3081_v54 = vld [vmem:[%s4438_s6 + $0x18] sm:$0xf] }
 0xd93   : > { %v2465_v57 = vsel %vm1060_vm5, %v3081_v54, 0 }
 0xd94   : > { %v3406_v58 = vpop.f32.mrf.mxu0  ;;  %v3412_v59 = vpop.f32.mrf.mxu1 }
 0xd96   : > { %v2114_v60 = vpop.f32.mrf.mxu0 }
 0xd97   : > { %v2115_v61 = vadd.f32 %v3997_v37, %v2114_v60 }
 0xd98   : > { %v3417_v63 = vpop.f32.mrf.mxu0 }
 0xd99   : > { %v2129_v0 = vsel %vm813_vm4, %v2115_v61, -inf }
 0xd9a   : > { %2130 = vmax.xlane.f32.xlu0 %v2129_v0  ;;  %v2117_v1 = vpop.f32.mrf.mxu0 }
 0xd9c   : > { %v3418_v3 = vpop.f32.mrf.mxu0 }
 0xda3   : > { %2168 = vrot.lane.b32.xlu1 %v4189_v9, %s3709_s12 }
 0xe13   : > { %v2122_v4 = vpop.xlane.xlu0 %2121 }
 0xe14   : > { %v2132_v5 = vsub.f32 %v1968_v42, %v2122_v4 }
 0xe16   : > { %v2136_v6 = vmul.f32 1.442695, %v2132_v5 }
 0xe18   : > { %3616 = vpow2.f32 %v2136_v6 }
 0xe1b   : > { %v2128_v7 = vpop.xlane.xlu0 %2127  ;;  %v2125_v8 = vpop.xlane.xlu1 %2124 }
 0xe1c   : > { %v2134_v62 = vsub.f32 %v2066_v50, %v2128_v7  ;;  %v2133_v10 = vsub.f32 %v2017_v49, %v2125_v8  ;;  %v3079_v49 = vld [vmem:[%s4438_s6 + $0x10] sm:$0xf] }
 0xe1d   : > { %v2373_v50 = vsel %vm1060_vm5, %v3079_v49, 0 }
 0xe1e   : > { %v2140_v11 = vmul.f32 1.442695, %v2134_v62  ;;  %v2138_v12 = vmul.f32 1.442695, %v2133_v10 }
 0xe1f   : > { %v2169_v37 = vpop.permute.xlu1 %2168 }
 0xe20   : > { %3618 = vpow2.f32 %v2140_v11  ;;  %v2174_v13 = vsel %vm1060_vm5, %v2169_v37, 0 }
 0xe21   : > { %3620 = vpow2.f32 %v2138_v12  ;;  %3420 = vmatpush3.bf16.msra.mxu1 %v2174_v13 }
 0xe22   : > { %3431 = vmatprep.subr.bf16.mxu1 %v3704_v2 }
 0xe23   : > { %v2131_v14 = vpop.xlane.xlu0 %2130 }
 0xe24   : > { %v2135_v9 = vsub.f32 %v2115_v61, %v2131_v14  ;;  %v3082_v61 = vld [vmem:[%s4438_s6 + $0x1c] sm:$0xf] }
 0xe25   : > { %v3617_v16 = vpop.eup %3616  ;;  %v2511_v5 = vsel %vm1060_vm5, %v3082_v61, 0  ;;  %v3586_v61 = vld [vmem:[%s4440_s8 + $0x28] sm:$0xff]  }
 0xe26   : > { %v2142_v17 = vmul.f32 1.442695, %v2135_v9  ;;  %v2144_v19 = vsel %vm813_vm4, %v3617_v16, 0.0 }
 0xe27   : > { %2145 = vadd.xlane.f32.xlu1 %v2144_v19 }
 0xe28   : > { %3622 = vpow2.f32 %v2142_v17 }
 0xe2d   : > { %v3619_v20 = vpop.eup %3618 }
 0xe2e   : > { %v3621_v22 = vpop.eup %3620  ;;  %v2150_v23 = vsel %vm813_vm4, %v3619_v20, 0.0 }
 0xe2f   : > { %2151 = vadd.xlane.f32.xlu1 %v2150_v23  ;;  %v2147_v26 = vsel %vm813_vm4, %v3621_v22, 0.0 }
 0xe30   : > { %2148 = vadd.xlane.f32.xlu0 %v2147_v26 }
 0xe35   : > { %v3623_v27 = vpop.eup %3622 }
 0xe36   : > { %v2153_v28 = vsel %vm813_vm4, %v3623_v27, 0.0 }
 0xe37   : > { %2154 = vadd.xlane.f32.xlu0 %v2153_v28 }
 0xe40   : > { %2264 = vrot.lane.b32.xlu1 %v4197_v15, %s3709_s12 }
 0xe44   : > { %2312 = vrot.lane.b32.xlu1 %v4206_v30, %s3709_s12 }
 0xe4d   : > { %2216 = vrot.lane.b32.xlu0 %v4201_v21, %s3709_s12  ;;  %s4451_s12 = smov 96  }
 0xeb0   : > { %v2146_v29 = vpop.xlane.xlu1 %2145 }
 0xeb1   : > { %3624 = vrcp.f32 %v2146_v29 }
 0xeb8   : > { %v2152_v31 = vpop.xlane.xlu1 %2151 }
 0xeb9   : > { %3626 = vrcp.f32 %v2152_v31  ;;  %v2149_v32 = vpop.xlane.xlu0 %2148 }
 0xeba   : > { %3628 = vrcp.f32 %v2149_v32 }
 0xebc   : > { %v2265_v35 = vpop.permute.xlu1 %2264 }
 0xebd   : > { %v2270_v15 = vsel %vm1060_vm5, %v2265_v35, 0 }
 0xebe   : > { %v3625_v25 = vpop.eup %3624 }
 0xebf   : > { %v2160_v34 = vmul.f32 %v3625_v25, %v3617_v16 }
 0xec0   : > { %v2155_v38 = vpop.xlane.xlu0 %2154  ;;  %v2313_v42 = vpop.permute.xlu1 %2312 }
 0xec1   : > { %3630 = vrcp.f32 %v2155_v38  ;;  %v2164_v39 = vpack.c.bf16 %v2160_v34, %v2160_v34  ;;  %v2318_v46 = vsel %vm1060_vm5, %v2313_v42, 0 }
 0xec3   : > { %3422 = vmatmul.mubr.msk.bf16.vlgmr.msra.gmra.mxu1 %vm813_vm4, %v2164_v39 }
 0xec4   : > { %3432 = vmatpush3.bf16.msra.mxu1 %v2270_v15  ;;  %v2217_v30 = vpop.permute.xlu0 %2216  ;;  %3433 = vmatprep.mubr.msk.bf16.mxu1 %vm3705_vm0, %v3704_v2 }
 0xec5   : > { %v2222_v21 = vsel %vm1060_vm5, %v2217_v30, 0  ;;  %3443 = vmatprep.subr.bf16.mxu1 %v3704_v2 }
 0xec6   : > { %v3627_v24 = vpop.eup %3626  ;;  %3426 = vmatpush3.bf16.msra.mxu0 %v2222_v21 }
 0xec7   : > { %v3629_v40 = vpop.eup %3628  ;;  %3437 = vmatprep.subr.bf16.mxu0 %v3704_v2  ;;  %v2162_v41 = vmul.f32 %v3627_v24, %v3619_v20 }
 0xec8   : > { %v2161_v33 = vmul.f32 %v3629_v40, %v3621_v22 }
 0xec9   : > { %v2166_v43 = vpack.c.bf16 %v2162_v41, %v2162_v41 }
 0xeca   : > { %v2165_v44 = vpack.c.bf16 %v2161_v33, %v2161_v33 }
 0xecb   : > { %3434 = vmatmul.mubr.msk.bf16.vlgmr.msra.gmra.mxu1 %vm813_vm4, %v2166_v43 }
 0xecc   : > { %3428 = vmatmul.mubr.msk.bf16.vlgmr.msra.gmra.mxu0 %vm813_vm4, %v2165_v44  ;;  %3445 = vmatprep.mubr.msk.bf16.mxu1 %vm3705_vm0, %v3704_v2 }
 0xecd   : > { %3438 = vmatpush3.bf16.msra.mxu0 %v2318_v46  ;;  %3439 = vmatprep.mubr.msk.bf16.mxu0 %vm3705_vm0, %v3704_v2 }
 0xece   : > { %v3631_v45 = vpop.eup %3630  ;;  %3449 = vmatprep.subr.bf16.mxu0 %v3704_v2  ;;  %3444 = vmatpush3.bf16.msra.mxu1 %v2373_v50 }
 0xecf   : > { %v2163_v47 = vmul.f32 %v3631_v45, %v3623_v27  ;;  %3455 = vmatprep.subr.bf16.mxu1 %v3704_v2  ;;  %v4309_v27 = vld [vmem:[%s4441_s9 + $0x2] sm:$0x3] }
 0xed0   : > { %v2557_v25 = vunpack.c.l.bf16 %v4309_v27 }
 0xed1   : > { %v2167_v48 = vpack.c.bf16 %v2163_v47, %v2163_v47  ;;  %v3583_v47 = vld [vmem:[%s4439_s7 + $0x10] sm:$0xff]  }
 0xed2   : > { %v4313_v15 = vrot.slane %v2557_v25, %v3875_v18 }
 0xed4   : > { %3440 = vmatmul.mubr.msk.bf16.vlgmr.msra.gmra.mxu0 %vm813_vm4, %v2167_v48 }
 0xed5   : > { %3451 = vmatprep.mubr.msk.bf16.mxu0 %vm3705_vm0, %v3704_v2  ;;  %3450 = vmatpush3.bf16.msra.mxu0 %v2419_v53 }
 0xed6   : > { %3461 = vmatprep.subr.bf16.mxu0 %v3704_v2 }
 0xf83   : > { %v2210_v55 = vpop.f32.mrf.mxu1 }
 0xf84   : > { %v2360_v56 = vpack.c.bf16 %v2210_v55, %v2210_v55 }
 0xf85   : > { %v3423_v58 = vpop.f32.mrf.mxu1 }
 0xf86   : > { %3446 = vmatmul.mubr.msk.bf16.vlgmr.msra.gmra.mxu1 %vm813_vm4, %v2360_v56 }
 0xf87   : > { %v2213_v59 = vpop.f32.mrf.mxu1  ;;  %3456 = vmatpush3.bf16.msra.mxu1 %v2465_v57  ;;  %3457 = vmatprep.mubr.msk.bf16.mxu1 %vm3705_vm0, %v3704_v2 }
 0xf88   : > { %3467 = vmatprep.subr.bf16.mxu1 %v3704_v2  ;;  %v3584_v59 = vld [vmem:[%s4440_s8 + $0x38] sm:$0xff]  }
 0xf89   : > { %v3424_v60 = vpop.f32.mrf.mxu1 }
 0xf8a   : > { %v3585_v60 = vld [vmem:[%s4440_s8 + $0x30] sm:$0xff]  }
 0xf8b   : > { %v2306_v63 = vpop.f32.mrf.mxu1 }
 0xf8c   : > { %v2258_v0 = vpop.f32.mrf.mxu0  ;;  %v2362_v1 = vpack.c.bf16 %v2306_v63, %v2306_v63  ;;  %v3587_v63 = vld [vmem:[%s4440_s8 + $0x20] sm:$0xff]  }
 0xf8d   : > { %v2361_v3 = vpack.c.bf16 %v2258_v0, %v2258_v0  ;;  %v3435_v4 = vpop.f32.mrf.mxu1  ;;  %v2592_v0 = vrot.slane %v4309_v27, 1 }
 0xf8e   : > { %v3429_v6 = vpop.f32.mrf.mxu0  ;;  %3458 = vmatmul.mubr.msk.bf16.vlgmr.msra.gmra.mxu1 %vm813_vm4, %v2362_v1 }
 0xf8f   : > { %3452 = vmatmul.mubr.msk.bf16.vlgmr.msra.gmra.mxu0 %vm813_vm4, %v2361_v3  ;;  %v2309_v7 = vpop.f32.mrf.mxu1  ;;  %3471 = vmatprep.mubr.msk.bf16.mxu1 %vm3705_vm0, %v3704_v2  ;;  %v2594_v1 = vunpack.c.l.bf16 %v2592_v0 }
 0xf90   : > { %v2261_v8 = vpop.f32.mrf.mxu0  ;;  %3462 = vmatpush3.bf16.msra.mxu0 %v2511_v5  ;;  %3463 = vmatprep.mubr.msk.bf16.mxu0 %vm3705_vm0, %v3704_v2 }
 0xf91   : > { %v3436_v62 = vpop.f32.mrf.mxu1  ;;  %3475 = vmatprep.subr.bf16.mxu0 %v3704_v2  ;;  %v2598_v3 = vrot.slane %v2594_v1, %v3875_v18 }
 0xf92   : > { %v3430_v10 = vpop.f32.mrf.mxu0 }
 0xf94   : > { %v2354_v11 = vpop.f32.mrf.mxu0 }
 0xf95   : > { %v2363_v12 = vpack.c.bf16 %v2354_v11, %v2354_v11 }
 0xf96   : > { %v3441_v37 = vpop.f32.mrf.mxu0 }
 0xf97   : > { %3464 = vmatmul.mubr.msk.bf16.vlgmr.msra.gmra.mxu0 %vm813_vm4, %v2363_v12 }
 0xf98   : > { %v2357_v13 = vpop.f32.mrf.mxu0  ;;  %3483 = vmatprep.mubr.msk.bf16.mxu0 %vm3705_vm0, %v3704_v2  ;;  %3476 = vmatpush3.bf16.msra.mxu0 %v3584_v59 }
 0xf99   : > { %3477 = vmatprep.subr.bf16.mxu0 %v3704_v2 }
 0xf9a   : > { %v3442_v14 = vpop.f32.mrf.mxu0 }
 0xf9c   : > { %3478 = vmatpush3.bf16.msra.mxu0 %v3585_v60 }
 0xf9d   : > { %3479 = vmatprep.subr.bf16.mxu0 %v3704_v2 }
 0xfa0   : > { %3480 = vmatpush3.bf16.msra.mxu0 %v3586_v61 }
 0xfa1   : > { %3481 = vmatprep.subr.bf16.mxu0 %v3704_v2 }
 0xfa4   : > { %3482 = vmatpush3.bf16.msra.mxu0 %v3587_v63 }
0x1046   : > { %v2409_v9 = vpop.f32.mrf.mxu1 }
0x1048   : > { %v3447_v16 = vpop.f32.mrf.mxu1 }
0x104a   : > { %v2412_v17 = vpop.f32.mrf.mxu1 }
0x104c   : > { %v3448_v19 = vpop.f32.mrf.mxu1 }
0x104e   : > { %v2501_v20 = vpop.f32.mrf.mxu1 }
0x104f   : > { %v2455_v22 = vpop.f32.mrf.mxu0 }
0x1050   : > { %v3459_v23 = vpop.f32.mrf.mxu1  ;;  %v2553_v28 = vadd.f32 %v2455_v22, %v2409_v9 }
0x1051   : > { %v3453_v26 = vpop.f32.mrf.mxu0 }
0x1052   : > { %v2504_v29 = vpop.f32.mrf.mxu1  ;;  %v2554_v35 = vadd.f32 %v2553_v28, %v2501_v20 }
0x1053   : > { %v2458_v31 = vpop.f32.mrf.mxu0 }
0x1054   : > { %v3460_v32 = vpop.f32.mrf.mxu1 }
0x1055   : > { %v3454_v34 = vpop.f32.mrf.mxu0 }
0x1057   : > { %v2547_v38 = vpop.f32.mrf.mxu0 }
0x1058   : > { %v2555_v39 = vadd.f32 %v2554_v35, %v2547_v38 }
0x1059   : > { %v3465_v30 = vpop.f32.mrf.mxu0 }
0x105a   : > { %v2556_v21 = vadd.f32 %v2555_v39, %v4146_v51  ;;  %v3582_v51 = vld [vmem:[%s4439_s7 + $0x18] sm:$0xff]  }
0x105b   : > { %v2550_v24 = vpop.f32.mrf.mxu0  ;;  %3468 = vmatpush3.bf16.msra.mxu1 %v3582_v51 }
0x105c   : > { %v2562_v40 = vadd.f32 %v4313_v15, %v2556_v21  ;;  %3469 = vmatprep.subr.bf16.mxu1 %v3704_v2  ;;  %v3588_v24 = vld [vmem:[%s4442_s10 + $0x10] ss:$8 sps:$4 sm:$0xff]  }
0x105d   : > { %v3466_v41 = vpop.f32.mrf.mxu0 }
0x105e   : > { %v2563_v33 = vsel %vm520_vm3, %v2562_v40, 0.0 }
0x105f   : > { %2564 = vadd.xlane.f32.xlu0 %v2563_v33  ;;  %3470 = vmatpush3.bf16.msra.mxu1 %v3583_v47 }
0x1060   : > { %3487 = vmatprep.subr.bf16.mxu1 %v3704_v2 }
0x1075   : > { %2577 = vrot.lane.b32.xlu0 %v4313_v15, %s4451_s12  ;;  %s2925_s12 = sshll.u32 %s387_s15, 4  ;;  %s4393_s12 = int_to_ptr.vmem [resolvable:$true] %s2925_s12 }
0x1076   : > { %s3641_s24 = scalar_lea.vmem %s4393_s12, 16  ;;  %p3648_p0 = scmp.lt.s32.totalorder %s4393_s12, %s3646_s30 }
0x1077   : > { %p3642_p11 = scmp.ne.s32.totalorder %s4393_s12, %s3641_s24 }
0x1079   : > { %2741 = vrot.lane.b32.xlu0 %v4309_v27, %s4452_s13  ;;  %p3643_p12 = pnand %p3642_p11, %p3811_p5 }
0x107b   : > { %p3644_p13 = pneg %p3643_p12 }
0x10e8   : > { %v2565_v42 = vpop.xlane.xlu0 %2564 }
0x10e9   : > { %v2566_v43 = vmul.f32 0.03125, %v2565_v42 }
0x10eb   : > { %v2567_v44 = vsub.f32 %v2562_v40, %v2566_v43 }
0x10ec   : > { %v2578_v53 = vpop.permute.xlu0 %2577 }
0x10ed   : > { %v2568_v46 = vmul.f32 %v2567_v44, %v2567_v44 }
0x10ef   : > { %v2569_v45 = vsel %vm520_vm3, %v2568_v46, 0.0 }
0x10f0   : > { %2570 = vadd.xlane.f32.xlu1 %v2569_v45  ;;  %v2742_v19 = vpop.permute.xlu0 %2741 }
0x10f1   : > { %v2743_v20 = vrot.slane %v2742_v19, 1 }
0x10f3   : > { %v2745_v22 = vunpack.c.l.bf16 %v2743_v20 }
0x10f5   : > { %v2749_v23 = vrot.slane %v2745_v22, %v3875_v18 }
0x1101   : > { %2581 = vrot.lane.b32.xlu1 %v4313_v15, %s4452_s13 }
0x1179   : > { %v2571_v48 = vpop.xlane.xlu1 %2570 }
0x117a   : > { %v2572_v49 = vmul.f32 0.03125, %v2571_v48 }
0x117c   : > { %v2573_v50 = vadd.f32 1e-12, %v2572_v49  ;;  %v3590_v49 = vld [vmem:[%s4442_s10 + $0x14] ss:$8 sps:$4 sm:$0xff]  }
0x117d   : > { %v2582_v55 = vpop.permute.xlu1 %2581 }
0x117e   : > { %3632 = vrsqrt.f32 %v2573_v50 }
0x118b   : > { %v3633_v52 = vpop.eup %3632 }
0x118c   : > { %v2575_v54 = vmul.f32 %v3633_v52, %v2567_v44 }
0x118e   : > { %v2580_v56 = vmul.f32 %v2578_v53, %v2575_v54 }
0x1190   : > { %v2584_v57 = vadd.f32 %v2582_v55, %v2580_v56 }
0x1192   : > { %v2590_v58 = vpack.c.bf16 %v2584_v57, %v2584_v57 }
0x1194   : > { %3472 = vmatmul.mubr.msk.bf16.vlgmr.msra.gmra.mxu1 %vm520_vm3, %v2590_v58 }
0x1195   : > { %3491 = vmatprep.mubr.msk.bf16.mxu1 %vm3705_vm0, %v3704_v2  ;;  %3488 = vmatpush3.bf16.msra.mxu1 %v3588_v24 }
0x1196   : > { %3489 = vmatprep.subr.bf16.mxu1 %v3704_v2 }
0x1254   : > { %v2648_v4 = vpop.f32.mrf.mxu1 }
0x1255   : > { %v2649_v5 = vadd.f32 %v2648_v4, %v2598_v3 }
0x1256   : > { %v3473_v6 = vpop.f32.mrf.mxu1 }
0x1257   : > { %v2654_v7 = vmul.f32 %v2649_v5, %v2649_v5 }
0x1258   : > { %v2651_v8 = vpop.f32.mrf.mxu1 }
0x1259   : > { %v2655_v62 = vmul.f32 %v2654_v7, %v2649_v5 }
0x125a   : > { %v3474_v10 = vpop.f32.mrf.mxu1 }
0x125b   : > { %v2656_v11 = vmul.f32 0.044715, %v2655_v62 }
0x125d   : > { %v2657_v12 = vadd.f32 %v2656_v11, %v2649_v5 }
0x125f   : > { %v2658_v37 = vmul.f32 0.7978846, %v2657_v12 }
0x1261   : > { %3634 = vtanh.f32 %v2658_v37 }
0x126e   : > { %v3635_v13 = vpop.eup %3634 }
0x126f   : > { %v2660_v14 = vadd.f32 1.0, %v3635_v13 }
0x1271   : > { %v2661_v9 = vmul.f32 0.5, %v2660_v14 }
0x1273   : > { %v2662_v16 = vmul.f32 %v2661_v9, %v2649_v5 }
0x1275   : > { %v2672_v17 = vpack.c.bf16 %v2662_v16, %v2662_v16 }
0x1277   : > { %3484 = vmatmul.mubr.msk.bf16.vlgmr.msra.gmra.mxu0 %vm1582_vm6, %v2672_v17 }
0x1337   : > { %v2734_v26 = vpop.f32.mrf.mxu0 }
0x1338   : > { %v2740_v28 = vadd.f32 %v2734_v26, %v2584_v57 }
0x1339   : > { %v3485_v29 = vpop.f32.mrf.mxu0 }
0x133a   : > { %v2750_v31 = vadd.f32 %v2749_v23, %v2740_v28 }
0x133b   : > { %v2737_v32 = vpop.f32.mrf.mxu0 }
0x133c   : > { %v2751_v25 = vsel %vm520_vm3, %v2750_v31, 0.0 }
0x133d   : > { %2752 = vadd.xlane.f32.xlu1 %v2751_v25  ;;  %v3486_v34 = vpop.f32.mrf.mxu0 }
0x134e   : > { %2764 = vrot.lane.b32.xlu1 %v4313_v15, %s3711_s25 }
0x1352   : > { %2800 = vrot.lane.b32.xlu1 %v3884_v36, %s4452_s13  ;;  %v3589_v36 = vld [vmem:[%s4442_s10] ss:$8 sps:$4 sm:$0xff]  }
0x1353   : > { %3490 = vmatpush3.bf16.msra.mxu1 %v3589_v36 }
0x1354   : > { %3495 = vmatprep.subr.bf16.mxu1 %v3704_v2 }
0x13c6   : > { %v2753_v35 = vpop.xlane.xlu1 %2752 }
0x13c7   : > { %v2754_v38 = vmul.f32 0.03125, %v2753_v35 }
0x13c9   : > { %v2755_v39 = vsub.f32 %v2750_v31, %v2754_v38 }
0x13ca   : > { %v2765_v46 = vpop.permute.xlu1 %2764 }
0x13cb   : > { %v2756_v30 = vmul.f32 %v2755_v39, %v2755_v39 }
0x13cd   : > { %v2757_v21 = vsel %vm520_vm3, %v2756_v30, 0.0 }
0x13ce   : > { %2758 = vadd.xlane.f32.xlu0 %v2757_v21  ;;  %v2801_v50 = vpop.permute.xlu1 %2800 }
0x13e4   : > { %2768 = vrot.lane.b32.xlu0 %v4309_v27, %s3711_s25  ;;  %s3647_s25 = scalar_lea.vmem %s3646_s30, 32 }
0x13e5   : > { %p3649_p1 = scmp.lt.s32.totalorder %s3647_s25, %s3641_s24 }
0x13e7   : > { %p3650_p2 = por %p3649_p1, %p3648_p0 }
0x13e9   : > { %p3651_p3 = pnand %p3650_p2, %p3644_p13 }
0x1457   : > { %v2759_v15 = vpop.xlane.xlu0 %2758 }
0x1458   : > { %v2760_v40 = vmul.f32 0.03125, %v2759_v15 }
0x145a   : > { %v2761_v41 = vadd.f32 1e-12, %v2760_v40 }
0x145b   : > { %v2769_v33 = vpop.permute.xlu0 %2768 }
0x145c   : > { %3636 = vrsqrt.f32 %v2761_v41  ;;  %v2770_v42 = vrot.slane %v2769_v33, 1 }
0x145e   : > { %v2772_v43 = vunpack.c.l.bf16 %v2770_v42 }
0x1460   : > { %v2776_v45 = vrot.slane %v2772_v43, %v3875_v18  ;;  %v3591_v18 = vld [vmem:[%s4442_s10 + $0x4] ss:$8 sps:$4 sm:$0xff]  }
0x1469   : > { %v3637_v44 = vpop.eup %3636 }
0x146a   : > { %v2763_v51 = vmul.f32 %v3637_v44, %v2755_v39 }
0x146c   : > { %v2767_v27 = vmul.f32 %v2765_v46, %v2763_v51 }
0x146e   : > { %v2777_v47 = vadd.f32 %v2776_v45, %v2767_v27 }
0x1470   : > { %v2782_v48 = vpack.c.bf16 %v2777_v47, %v2777_v47 }
0x1472   : > { %3492 = vmatmul.mubr.msk.bf16.vlgmr.msra.gmra.mxu1 %vm520_vm3, %v2782_v48 }
0x1473   : > { %3499 = vmatprep.mubr.msk.bf16.mxu1 %vm3705_vm0, %v3704_v2  ;;  %3496 = vmatpush3.bf16.msra.mxu1 %v3590_v49 }
0x1474   : > { %3497 = vmatprep.subr.bf16.mxu1 %v3704_v2  ;;  %v3640_v2 = vld [vmem:[%s4435_s3] sm:$0x3] }
0x1475   : > { %v2853_v59 = vrot.slane %v3640_v2, 1 }
0x1477   : > { %3498 = vmatpush3.bf16.msra.mxu1 %v3591_v18  ;;  %v2855_v60 = vunpack.c.l.bf16 %v2853_v59 }
0x1532   : > { %v2840_v52 = vpop.f32.mrf.mxu1 }
0x1533   : > { %v2841_v53 = vadd.f32 %v2840_v52, %v2801_v50 }
0x1534   : > { %v3493_v54 = vpop.f32.mrf.mxu1 }
0x1535   : > { %3638 = vtanh.f32 %v2841_v53 }
0x1536   : > { %v2843_v55 = vpop.f32.mrf.mxu1 }
0x1538   : > { %v3494_v56 = vpop.f32.mrf.mxu1 }
0x1542   : > { %v3639_v57 = vpop.eup %3638 }
0x1543   : > { %v2851_v58 = vpack.c.bf16 %v3639_v57, %v3639_v57 }
0x1545   : > { %3500 = vmatmul.mubr.msk.bf16.vlgmr.msra.gmra.mxu1 %vm520_vm3, %v2851_v58 }
0x1605   : > { %v2905_v61 = vpop.f32.mrf.mxu1 }
0x1606   : > { %v2906_v63 = vadd.f32 %v2905_v61, %v2855_v60 }
0x1607   : > { %v3501_v0 = vpop.f32.mrf.mxu1 }
0x1608   : > { %2911 = vst [vmem:[%s387_s15] sm:$0x1] %v2906_v63 }
0x1609   : > { %v2908_v1 = vpop.f32.mrf.mxu1 }
0x160a   : > { %3654 = shalt.err (!%p3651_p3)
}
0x160b   : > { %s3655_s29 = scalar_lea.hbm %s4391_s14, 16  ;;  %s3659_s13 = scalar_lea.hbm %s4443_s11, 32 }
0x160c   : > { %p3656_p4 = scmp.ne.s32.totalorder %s4391_s14, %s3655_s29  ;;  %p3660_p9 = scmp.lt.s32.totalorder %s4391_s14, %s4443_s11 }
0x160d   : > { %p3661_p10 = scmp.lt.s32.totalorder %s3659_s13, %s3655_s29 }
0x160e   : > { %p3657_p7 = pnand %p3656_p4, %p3811_p5 }
0x160f   : > { %p3662_p11 = por %p3661_p10, %p3660_p9 }
0x1610   : > { %p3658_p8 = pneg %p3657_p7 }
0x1612   : > { %p3663_p12 = pnand %p3662_p11, %p3658_p8 }
0x1614   : > { %3666 = shalt.err (!%p3663_p12)
}
0x1615   : > { %3503 = dma.vmem_to_hbm [thread:$0]  (%p3811_p5), %s4393_s12, 16, %s4391_s14, %s2913_s16   ;;  %v3502_v3 = vpop.f32.mrf.mxu1 }
0x1616 PF: > { %p3509_p13 = scmp.ge.s32.totalorder %s3701_s20, 2  ;;  %s2937_s24 = sand.u32 1, %s3689_s17  }
0x1617   : > { %s2938_s0 = scalar_lea.sflag [#allocation3], %s2937_s24 }
0x1618   : > { %p3506_p0 = pnand %p3509_p13, %p3815_p6 }
0x161a   : > { %p3507_p1 = pneg %p3506_p0 }
0x161c   : > { %3684 = dma.done.wait (%p3507_p1), %s2938_s0, 16  }
0x161d   : > { %3686 = vsyncadd (%p3507_p1), %s2938_s0, 4294967280  ;;  %p21_p2 = scmp.ge.s32.totalorder %s3798_s23, 4   ;;  %s4453_s17 = smov %s3693_s18 }
0x161e   : > { %s4454_s18 = smov %s3697_s19  ;;  %s4455_s19 = smov %s3809_s26 }
0x161f   : > { %s4456_s20 = smov %s3798_s23  ;;  %23 = sbr.rel (!%p21_p2) target bundleno = 5 (0x5), region = 108 }
0x1624   :  { %2942 = vsyncpa [#allocation3], 1 }
0x1625   :  { %2944 = vsyncpa [#allocation3 + $0x1], 1 }

</bundles_post_ra>
